<compile_context>
chip_gen: v7x
topology: tpu7x:2x2x1
jax: 0.10.0
libtpu: 0.0.40
codegen_flags: <defaults>
</compile_context>

<pallas_src>
import jax
import jax.numpy as jnp
import numpy as np
from jax import lax
from jax.experimental import pallas as pl
from jax.experimental.pallas import tpu as pltpu

EPS = 1e-5


# ----------------------------- Pallas kernel -------------------------------

def _decoder_block_kernel(x_ref, w1_ref, wdec_ref, w3_ref, bias_ref, o_ref,
                          h1s_ref):
    # x_ref   : (1, H, W, Cin)  f32   one batch element, NHWC
    # w1_ref  : (Cin, C4)       bf16  conv1 weight, BN1 scale folded
    # wdec_ref: (4*C4, 4*C4)    bf16  all 9 deconv taps + BN2 scale,
    #                                 rows = neighbour groups [g0..g3],
    #                                 cols = sub-pixel phases [p0..p3]
    # w3_ref  : (4*C4, 4*Cout)  bf16  block-diagonal conv3 weight + BN3 scale
    # bias_ref: (3, >=128)      f32   row0[:C4]=be1, row1[:4*C4]=be2(tiled),
    #                                 row2[:4*Cout]=be3(tiled)
    # o_ref   : (1, H, W, 4*Cout)     lane-dense output slab, channel = (pr,pc,c)
    # h1s_ref : VMEM (H+1, W+1, C4) f32 scratch: stage-1 activation + zero halo
    H, W = x_ref.shape[1], x_ref.shape[2]
    Cin = x_ref.shape[3]
    C4 = w1_ref.shape[1]
    G4 = wdec_ref.shape[1]          # 4 * C4
    Co4 = w3_ref.shape[1]           # 4 * Cout

    be1 = bias_ref[0:1, 0:C4]
    be2 = bias_ref[1:2, 0:G4]
    be3 = bias_ref[2:3, 0:Co4]

    # ---- stage 1: 1x1 conv + BN + ReLU (pure channel matmul on the MXU) ----
    x2d = x_ref[0].reshape(H * W, Cin).astype(jnp.bfloat16)
    h1 = jnp.dot(x2d, w1_ref[...], preferred_element_type=jnp.float32) + be1
    h1 = jnp.maximum(h1, 0.0)                                  # (H*W, C4) f32

    # Stage-1 activation -> VMEM scratch with a one-pixel zero halo at row H /
    # column W (supplies the out-of-range taps of the stride-2 transposed conv).
    # Only the halo is zeroed, and it is zeroed every step: with a "parallel"
    # grid axis the steps may land on different TensorCores, so a
    # program_id==0-only init would be unsafe.
    h1s_ref[H:H + 1, :, :] = jnp.zeros((1, W + 1, C4), jnp.float32)
    h1s_ref[:, W:W + 1, :] = jnp.zeros((H + 1, 1, C4), jnp.float32)
    h1s_ref[0:H, 0:W, :] = h1.reshape(H, W, C4)

    # Shifted-neighbour reads (g0 stays in-register; the +1-row read g2 is a
    # free leading-dim offset, the +1-column reads g1/g3 are the remaining
    # misaligned slices -- see TODO above).
    g0 = h1                                                     # in[m,   n  ]
    g1 = h1s_ref[0:H, 1:W + 1, :].reshape(H * W, C4)            # in[m,   n+1]
    g2 = h1s_ref[1:H + 1, 0:W, :].reshape(H * W, C4)            # in[m+1, n  ]
    g3 = h1s_ref[1:H + 1, 1:W + 1, :].reshape(H * W, C4)        # in[m+1, n+1]
    x4 = jnp.concatenate([g0, g1, g2, g3], axis=1).astype(jnp.bfloat16)

    # ---- stage 2: all 4 sub-pixel phases of ConvTranspose2d in ONE matmul ----
    #   out[2m,  2n  ] = g0@W11
    #   out[2m,  2n+1] = g0@W12 + g1@W10
    #   out[2m+1,2n  ] = g0@W21 + g2@W01
    #   out[2m+1,2n+1] = g0@W22 + g1@W20 + g2@W02 + g3@W00
    # encoded block-wise in wdec_ref (zeros elsewhere).
    z = jnp.dot(x4, wdec_ref[...], preferred_element_type=jnp.float32) + be2
    z = jnp.maximum(z, 0.0).astype(jnp.bfloat16)                # (H*W, 4*C4)

    # ---- stage 3: block-diagonal 1x1 conv + BN + ReLU -> lane-dense slab ----
    y = jnp.dot(z, w3_ref[...], preferred_element_type=jnp.float32) + be3
    y = jnp.maximum(y, 0.0)                                     # (H*W, 4*Cout)
    o_ref[0] = y.reshape(H, W, Co4).astype(o_ref.dtype)


# ------------------------------- wrapper ------------------------------------

def decoder_block(x, w1_bf16, wdec_bf16, w3_bf16, bias_pack):
    N, H, W, Cin = x.shape
    C4 = w1_bf16.shape[1]
    G4 = wdec_bf16.shape[1]            # 4*C4
    Co4 = w3_bf16.shape[1]             # 4*Cout
    Cout = Co4 // 4
    bw = bias_pack.shape[1]

    slab = pl.pallas_call(
        _decoder_block_kernel,
        out_shape=jax.ShapeDtypeStruct((N, H, W, Co4), x.dtype),
        grid=(N,),
        in_specs=[
            pl.BlockSpec((1, H, W, Cin), lambda n: (n, 0, 0, 0)),
            pl.BlockSpec((Cin, C4), lambda n: (0, 0)),
            pl.BlockSpec((G4, G4), lambda n: (0, 0)),
            pl.BlockSpec((G4, Co4), lambda n: (0, 0)),
            pl.BlockSpec((3, bw), lambda n: (0, 0)),
        ],
        out_specs=pl.BlockSpec((1, H, W, Co4), lambda n: (n, 0, 0, 0, )[:5 - 1] + (0,) if False else (n, 0, 0, 0)),
        scratch_shapes=[pltpu.VMEM((H + 1, W + 1, C4), jnp.float32)],
        # VMEM use per step is well under every generation's default scoped
        # limit at these sizes; set vmem_limit_bytes when tiles grow (v5e!).
        compiler_params=pltpu.CompilerParams(
            dimension_semantics=("parallel",)),
    )(x, w1_bf16, wdec_bf16, w3_bf16, bias_pack)

    # phase -> pixel interleave: channel order is (pr, pc, c).
    # TODO(synk): at real resolutions let the consumer take this layout
    # directly instead of paying an extra HBM transpose pass.
    out = slab.reshape(N, H, W, 2, 2, Cout)
    return out.transpose(0, 1, 3, 2, 4, 5).reshape(N, 2 * H, 2 * W, Cout)


# -------------------------- pure-JAX reference -------------------------------

def ref_forward(x, c1w, c1b, bn1, dw, db, bn2, c3w, c3b, bn3):
    prec = jax.lax.Precision.HIGHEST
    dn = ("NHWC", "HWIO", "NHWC")

    def bn_apply(y, p):
        g, b, m, v = p
        return (y - m) * (g / jnp.sqrt(v + EPS)) + b

    # conv1 (1x1) + BN + ReLU
    y = lax.conv_general_dilated(x, jnp.transpose(c1w, (2, 3, 1, 0)), (1, 1),
                                 "VALID", dimension_numbers=dn, precision=prec) + c1b
    y = jax.nn.relu(bn_apply(y, bn1))
    # ConvTranspose2d(k=3, s=2, p=1, op=1) == conv over 2x-dilated input,
    # padding (1,2), with the spatially-flipped kernel (ci/co swapped to HWIO).
    rhs = jnp.transpose(jnp.flip(dw, (2, 3)), (2, 3, 0, 1))
    y = lax.conv_general_dilated(y, rhs, (1, 1), ((1, 2), (1, 2)),
                                 lhs_dilation=(2, 2), dimension_numbers=dn,
                                 precision=prec) + db
    y = jax.nn.relu(bn_apply(y, bn2))
    # conv3 (1x1) + BN + ReLU
    y = lax.conv_general_dilated(y, jnp.transpose(c3w, (2, 3, 1, 0)), (1, 1),
                                 "VALID", dimension_numbers=dn, precision=prec) + c3b
    return jax.nn.relu(bn_apply(y, bn3))


# ---------------------------------- main -------------------------------------

if __name__ == "__main__":
    N, Cin, H, W = 4, 64, 16, 16       # in_channels=64 -> C4=16, n_filters=32
    C4 = Cin // 4
    Cout = 32
    key = jax.random.PRNGKey(0)
    ks = jax.random.split(key, 10)

    # conv weights / biases (PyTorch layouts, deterministic synthetic init)
    c1w = jax.random.normal(ks[0], (C4, Cin, 1, 1), jnp.float32) * 0.1   # (O,I,1,1)
    c1b = jax.random.normal(ks[1], (C4,), jnp.float32) * 0.1
    dw = jax.random.normal(ks[2], (C4, C4, 3, 3), jnp.float32) * 0.1     # (I,O,kh,kw)
    db = jax.random.normal(ks[3], (C4,), jnp.float32) * 0.1
    c3w = jax.random.normal(ks[4], (Cout, C4, 1, 1), jnp.float32) * 0.1  # (O,I,1,1)
    c3b = jax.random.normal(ks[5], (Cout,), jnp.float32) * 0.1

    # eval-mode BatchNorms with non-trivial gamma/beta/running stats.
    def make_bn(k, c):
        kg, kb, km, kv = jax.random.split(k, 4)
        gamma = jax.random.uniform(kg, (c,), jnp.float32, minval=0.5, maxval=1.5)
        beta = jax.random.normal(kb, (c,), jnp.float32) * 0.1
        mean = jax.random.normal(km, (c,), jnp.float32) * 0.1
        var = jax.random.uniform(kv, (c,), jnp.float32, minval=0.5, maxval=1.5)
        return gamma, beta, mean, var

    bn1 = make_bn(ks[6], C4)
    bn2 = make_bn(ks[7], C4)
    bn3 = make_bn(ks[8], Cout)

    # fold BN (running stats) into per-channel scale/shift, then into weights.
    def fold_bn(p):
        g, b, m, v = p
        s = g / jnp.sqrt(v + EPS)
        return s, b - m * s

    s1, sh1 = fold_bn(bn1)
    s2, sh2 = fold_bn(bn2)
    s3, sh3 = fold_bn(bn3)

    # stage-1 folded weight / bias
    w1_eff = c1w[:, :, 0, 0].T * s1[None, :]                     # (Cin, C4)
    be1 = s1 * c1b + sh1                                         # (C4,)

    # stage-2: pre-stack the 9 taps into one (4*C4, 4*C4) weight.
    # rows = neighbour groups [g0=in(m,n), g1=in(m,n+1), g2=in(m+1,n), g3=in(m+1,n+1)]
    # cols = sub-pixel phases  [p0=(0,0), p1=(0,1), p2=(1,0), p3=(1,1)]
    wd_scaled = dw * s2[None, :, None, None]                     # scale output chans
    T = jnp.transpose(wd_scaled, (2, 3, 0, 1))                   # (kh, kw, I, O)
    Zb = jnp.zeros((C4, C4), jnp.float32)
    wdec = jnp.block([
        [T[1, 1], T[1, 2], T[2, 1], T[2, 2]],                    # g0
        [Zb,      T[1, 0], Zb,      T[2, 0]],                    # g1
        [Zb,      Zb,      T[0, 1], T[0, 2]],                    # g2
        [Zb,      Zb,      Zb,      T[0, 0]],                    # g3
    ])                                                           # (4*C4, 4*C4)
    be2 = s2 * db + sh2                                          # (C4,)

    # stage-3: block-diagonal conv3 weight -> lane-dense (4*C4, 4*Cout).
    w3_eff = c3w[:, :, 0, 0].T * s3[None, :]                     # (C4, Cout)
    w3_big = jax.scipy.linalg.block_diag(w3_eff, w3_eff, w3_eff, w3_eff)
    be3 = s3 * c3b + sh3                                         # (Cout,)

    # pack the three bias vectors into one lane-dense (3, 128) slab.
    bw = max(C4, 4 * C4, 4 * Cout)
    bw = ((bw + 127) // 128) * 128
    bias_pack = jnp.zeros((3, bw), jnp.float32)
    bias_pack = bias_pack.at[0, :C4].set(be1)
    bias_pack = bias_pack.at[1, :4 * C4].set(jnp.tile(be2, 4))
    bias_pack = bias_pack.at[2, :4 * Cout].set(jnp.tile(be3, 4))

    # bf16 MXU operands (f32 accumulation happens inside the kernel).
    w1_bf16 = w1_eff.astype(jnp.bfloat16)
    wdec_bf16 = wdec.astype(jnp.bfloat16)
    w3_bf16 = w3_big.astype(jnp.bfloat16)

    # input: PyTorch NCHW -> NHWC (channels onto the lane axis)
    x_nchw = jax.random.normal(ks[9], (N, Cin, H, W), jnp.float32)
    x = jnp.transpose(x_nchw, (0, 2, 3, 1))

    out = decoder_block(x, w1_bf16, wdec_bf16, w3_bf16, bias_pack)
    out = jax.block_until_ready(out)

    ref = ref_forward(x, c1w, c1b, bn1, dw, db, bn2, c3w, c3b, bn3)
    # Tolerance reflects bf16 MXU operand rounding (f32 accumulation); the
    # all-f32 variant of this kernel matched the f32 reference at 1e-3.
    np.testing.assert_allclose(np.asarray(out), np.asarray(ref),
                               rtol=1e-2, atol=1e-2)
    print("KERNEL_OK")
</pallas_src>

<mosaic_0001>
module attributes {stable_mosaic.version = 11 : i64} {
  func.func @_decoder_block_kernel(%arg0: i32, %arg1: memref<1x16x16x64xf32, #tpu.memory_space<vmem>>, %arg2: memref<64x16xbf16, #tpu.memory_space<vmem>>, %arg3: memref<64x64xbf16, #tpu.memory_space<vmem>>, %arg4: memref<64x128xbf16, #tpu.memory_space<vmem>>, %arg5: memref<3x128xf32, #tpu.memory_space<vmem>>, %arg6: memref<1x16x16x128xf32, #tpu.memory_space<vmem>>, %arg7: memref<17x17x16xf32, #tpu.memory_space<vmem>>) attributes {dimension_semantics = [#tpu.dimension_semantics<parallel>], iteration_bounds = array<i64: 4>, scalar_prefetch = 0 : i64, scratch_operands = 1 : i64, tpu.core_type = #tpu.core_type<tc>, window_params = [{transform_indices = @transform_0, window_bounds = array<i64: 1, 16, 16, 64>}, {pipeline_mode = #tpu.pipeline_mode<synchronous>, transform_indices = @transform_1, window_bounds = array<i64: 64, 16>}, {pipeline_mode = #tpu.pipeline_mode<synchronous>, transform_indices = @transform_2, window_bounds = array<i64: 64, 64>}, {pipeline_mode = #tpu.pipeline_mode<synchronous>, transform_indices = @transform_3, window_bounds = array<i64: 64, 128>}, {pipeline_mode = #tpu.pipeline_mode<synchronous>, transform_indices = @transform_4, window_bounds = array<i64: 3, 128>}, {transform_indices = @transform_5, window_bounds = array<i64: 1, 16, 16, 128>}]} {
    %c0 = arith.constant 0 : index
    %c0_0 = arith.constant 0 : index
    %0 = vector.load %arg5[%c0, %c0_0] : memref<3x128xf32, #tpu.memory_space<vmem>>, vector<1x16xf32>
    %c1 = arith.constant 1 : index
    %c0_1 = arith.constant 0 : index
    %1 = vector.load %arg5[%c1, %c0_1] : memref<3x128xf32, #tpu.memory_space<vmem>>, vector<1x64xf32>
    %c2 = arith.constant 2 : index
    %c0_2 = arith.constant 0 : index
    %2 = vector.load %arg5[%c2, %c0_2] : memref<3x128xf32, #tpu.memory_space<vmem>>, vector<1x128xf32>
    %c0_3 = arith.constant 0 : index
    %c0_4 = arith.constant 0 : index
    %c0_5 = arith.constant 0 : index
    %c0_6 = arith.constant 0 : index
    %3 = vector.load %arg1[%c0_3, %c0_4, %c0_5, %c0_6] : memref<1x16x16x64xf32, #tpu.memory_space<vmem>>, vector<1x16x16x64xf32>
    %4 = vector.shape_cast %3 : vector<1x16x16x64xf32> to vector<16x16x64xf32>
    %5 = vector.shape_cast %4 : vector<16x16x64xf32> to vector<256x64xf32>
    %6 = arith.truncf %5 : vector<256x64xf32> to vector<256x64xbf16>
    %c0_7 = arith.constant 0 : index
    %c0_8 = arith.constant 0 : index
    %7 = vector.load %arg2[%c0_7, %c0_8] : memref<64x16xbf16, #tpu.memory_space<vmem>>, vector<64x16xbf16>
    %cst = arith.constant dense<0.000000e+00> : vector<256x16xf32>
    %8 = tpu.matmul %6, %7, %cst {dimension_numbers = #tpu.dot_dimension_numbers<[1], [0], [0], [1], [0, 0, 1, 1], [], []>} : vector<256x64xbf16>, vector<64x16xbf16>, vector<256x16xf32> -> vector<256x16xf32>
    %9 = vector.broadcast %0 : vector<1x16xf32> to vector<256x16xf32>
    %10 = arith.addf %8, %9 : vector<256x16xf32>
    %cst_9 = arith.constant 0.000000e+00 : f32
    %11 = vector.broadcast %cst_9 : f32 to vector<256x16xf32>
    %12 = arith.maximumf %10, %11 : vector<256x16xf32>
    %cst_10 = arith.constant 0.000000e+00 : f32
    %13 = vector.broadcast %cst_10 : f32 to vector<1x17x16xf32>
    %c16 = arith.constant 16 : index
    %c0_11 = arith.constant 0 : index
    %c0_12 = arith.constant 0 : index
    %14 = vector.load %arg7[%c16, %c0_11, %c0_12] : memref<17x17x16xf32, #tpu.memory_space<vmem>>, vector<1x17x16xf32>
    tpu.vector_store %arg7[%c16, %c0_11, %c0_12], %13 {strides = array<i32>} : memref<17x17x16xf32, #tpu.memory_space<vmem>>, vector<1x17x16xf32>,
    %cst_13 = arith.constant 0.000000e+00 : f32
    %15 = vector.broadcast %cst_13 : f32 to vector<17x1x16xf32>
    %c0_14 = arith.constant 0 : index
    %c16_15 = arith.constant 16 : index
    %c0_16 = arith.constant 0 : index
    %16 = vector.load %arg7[%c0_14, %c16_15, %c0_16] : memref<17x17x16xf32, #tpu.memory_space<vmem>>, vector<17x1x16xf32>
    tpu.vector_store %arg7[%c0_14, %c16_15, %c0_16], %15 {strides = array<i32>} : memref<17x17x16xf32, #tpu.memory_space<vmem>>, vector<17x1x16xf32>,
    %17 = vector.shape_cast %12 : vector<256x16xf32> to vector<16x16x16xf32>
    %c0_17 = arith.constant 0 : index
    %c0_18 = arith.constant 0 : index
    %c0_19 = arith.constant 0 : index
    %18 = vector.load %arg7[%c0_17, %c0_18, %c0_19] : memref<17x17x16xf32, #tpu.memory_space<vmem>>, vector<16x16x16xf32>
    tpu.vector_store %arg7[%c0_17, %c0_18, %c0_19], %17 {strides = array<i32>} : memref<17x17x16xf32, #tpu.memory_space<vmem>>, vector<16x16x16xf32>,
    %c0_20 = arith.constant 0 : index
    %c1_21 = arith.constant 1 : index
    %c0_22 = arith.constant 0 : index
    %19 = vector.load %arg7[%c0_20, %c1_21, %c0_22] : memref<17x17x16xf32, #tpu.memory_space<vmem>>, vector<16x16x16xf32>
    %20 = vector.shape_cast %19 : vector<16x16x16xf32> to vector<256x16xf32>
    %c1_23 = arith.constant 1 : index
    %c0_24 = arith.constant 0 : index
    %c0_25 = arith.constant 0 : index
    %21 = vector.load %arg7[%c1_23, %c0_24, %c0_25] : memref<17x17x16xf32, #tpu.memory_space<vmem>>, vector<16x16x16xf32>
    %22 = vector.shape_cast %21 : vector<16x16x16xf32> to vector<256x16xf32>
    %c1_26 = arith.constant 1 : index
    %c1_27 = arith.constant 1 : index
    %c0_28 = arith.constant 0 : index
    %23 = vector.load %arg7[%c1_26, %c1_27, %c0_28] : memref<17x17x16xf32, #tpu.memory_space<vmem>>, vector<16x16x16xf32>
    %24 = vector.shape_cast %23 : vector<16x16x16xf32> to vector<256x16xf32>
    %25 = tpu.concatenate %12, %20, %22, %24 in 1 : vector<256x16xf32>, vector<256x16xf32>, vector<256x16xf32>, vector<256x16xf32> -> vector<256x64xf32>
    %26 = arith.truncf %25 : vector<256x64xf32> to vector<256x64xbf16>
    %c0_29 = arith.constant 0 : index
    %c0_30 = arith.constant 0 : index
    %27 = vector.load %arg3[%c0_29, %c0_30] : memref<64x64xbf16, #tpu.memory_space<vmem>>, vector<64x64xbf16>
    %cst_31 = arith.constant dense<0.000000e+00> : vector<256x64xf32>
    %28 = tpu.matmul %26, %27, %cst_31 {dimension_numbers = #tpu.dot_dimension_numbers<[1], [0], [0], [1], [0, 0, 1, 1], [], []>} : vector<256x64xbf16>, vector<64x64xbf16>, vector<256x64xf32> -> vector<256x64xf32>
    %29 = vector.broadcast %1 : vector<1x64xf32> to vector<256x64xf32>
    %30 = arith.addf %28, %29 : vector<256x64xf32>
    %cst_32 = arith.constant 0.000000e+00 : f32
    %31 = vector.broadcast %cst_32 : f32 to vector<256x64xf32>
    %32 = arith.maximumf %30, %31 : vector<256x64xf32>
    %33 = arith.truncf %32 : vector<256x64xf32> to vector<256x64xbf16>
    %c0_33 = arith.constant 0 : index
    %c0_34 = arith.constant 0 : index
    %34 = vector.load %arg4[%c0_33, %c0_34] : memref<64x128xbf16, #tpu.memory_space<vmem>>, vector<64x128xbf16>
    %cst_35 = arith.constant dense<0.000000e+00> : vector<256x128xf32>
    %35 = tpu.matmul %33, %34, %cst_35 {dimension_numbers = #tpu.dot_dimension_numbers<[1], [0], [0], [1], [0, 0, 1, 1], [], []>} : vector<256x64xbf16>, vector<64x128xbf16>, vector<256x128xf32> -> vector<256x128xf32>
    %36 = vector.broadcast %2 : vector<1x128xf32> to vector<256x128xf32>
    %37 = arith.addf %35, %36 : vector<256x128xf32>
    %cst_36 = arith.constant 0.000000e+00 : f32
    %38 = vector.broadcast %cst_36 : f32 to vector<256x128xf32>
    %39 = arith.maximumf %37, %38 : vector<256x128xf32>
    %40 = vector.shape_cast %39 : vector<256x128xf32> to vector<16x16x128xf32>
    %c0_37 = arith.constant 0 : index
    %c0_38 = arith.constant 0 : index
    %c0_39 = arith.constant 0 : index
    %c0_40 = arith.constant 0 : index
    %41 = vector.load %arg6[%c0_37, %c0_38, %c0_39, %c0_40] : memref<1x16x16x128xf32, #tpu.memory_space<vmem>>, vector<1x16x16x128xf32>
    %42 = vector.shape_cast %41 : vector<1x16x16x128xf32> to vector<16x16x128xf32>
    %43 = vector.shape_cast %40 : vector<16x16x128xf32> to vector<1x16x16x128xf32>
    tpu.vector_store %arg6[%c0_37, %c0_38, %c0_39, %c0_40], %43 {strides = array<i32>} : memref<1x16x16x128xf32, #tpu.memory_space<vmem>>, vector<1x16x16x128xf32>,
    return
  }
  func.func @transform_0(%arg0: i32) -> (i32, i32, i32, i32) {
    %c0_i32 = arith.constant 0 : i32
    %c0_i32_0 = arith.constant 0 : i32
    %c0_i32_1 = arith.constant 0 : i32
    %c0_i32_2 = arith.constant 0 : i32
    return %arg0, %c0_i32, %c0_i32_0, %c0_i32_1 : i32, i32, i32, i32
  }
  func.func @transform_1(%arg0: i32) -> (i32, i32) {
    %c0_i32 = arith.constant 0 : i32
    %c0_i32_0 = arith.constant 0 : i32
    %c0_i32_1 = arith.constant 0 : i32
    return %c0_i32, %c0_i32_0 : i32, i32
  }
  func.func @transform_2(%arg0: i32) -> (i32, i32) {
    %c0_i32 = arith.constant 0 : i32
    %c0_i32_0 = arith.constant 0 : i32
    %c0_i32_1 = arith.constant 0 : i32
    return %c0_i32, %c0_i32_0 : i32, i32
  }
  func.func @transform_3(%arg0: i32) -> (i32, i32) {
    %c0_i32 = arith.constant 0 : i32
    %c0_i32_0 = arith.constant 0 : i32
    %c0_i32_1 = arith.constant 0 : i32
    return %c0_i32, %c0_i32_0 : i32, i32
  }
  func.func @transform_4(%arg0: i32) -> (i32, i32) {
    %c0_i32 = arith.constant 0 : i32
    %c0_i32_0 = arith.constant 0 : i32
    %c0_i32_1 = arith.constant 0 : i32
    return %c0_i32, %c0_i32_0 : i32, i32
  }
  func.func @transform_5(%arg0: i32) -> (i32, i32, i32, i32) {
    %c0_i32 = arith.constant 0 : i32
    %c0_i32_0 = arith.constant 0 : i32
    %c0_i32_1 = arith.constant 0 : i32
    %c0_i32_2 = arith.constant 0 : i32
    return %arg0, %c0_i32, %c0_i32_0, %c0_i32_1 : i32, i32, i32, i32
  }
}

</mosaic_0001>

<bundles_post_ra>
// kernel: tpu_custom_call.1
= control target key start
LH: loop header
LB: loop body
LE: loop exit
PB: predicated region body
PF: predicated region fallthrough
CT: control target
= control target key end

     0   :  { %10 = vsyncpa [#allocation4], 0  ;;  %s3606_s0 = inlined_call_operand.hbm [shape: f32[4,16,16,64], index: 0, kind: input, shape index: {}]   ;;  %s3607_s1 = inlined_call_operand.vmem [shape: bf16[64,16], index: 1, kind: input, shape index: {}]   ;;  %s3608_s2 = inlined_call_operand.vmem [shape: bf16[64,64], index: 2, kind: input, shape index: {}]   ;;  %s3609_s3 = inlined_call_operand.hbm [shape: bf16[64,128], index: 3, kind: input, shape index: {}]   ;;  %s3610_s4 = inlined_call_operand.vmem [shape: f32[3,128], index: 4, kind: input, shape index: {}]   ;;  %s3611_s5 = inlined_call_operand.hbm [shape: f32[4,16,16,128], index: 5, kind: output, shape index: {}]  }
   0x1   :  { %12 = vsyncpa [#allocation4 + $0x1], 0 }
   0x2   :  { %13 = vsyncpa [#allocation7], 0 }
   0x3   :  { %14 = vsyncpa [#allocation5], 0 }
   0x4   :  { %16 = vsyncpa [#allocation5 + $0x1], 0  ;;  %s2698_s18 = smov 0   ;;  %s2700_s19 = smov 0  }
   0x5   :  { %s2702_s20 = smov 0   ;;  %s2704_s21 = smov 0  }
   0x6 LB: > { %s2719_s22 = sadd.s32 4294967295, %s2653_s21   ;;  %s1937_s23 = sadd.s32 4294967294, %s2653_s21   ;;  %s2653_s21 = sphi %s2704_s21, %s3676_s21   ;;  %s2649_s20 = sphi %s2702_s20, %s3675_s20   ;;  %s2645_s19 = sphi %s2700_s19, %s3674_s19   ;;  %s2641_s18 = sphi %s2698_s18, %s3673_s18  }
   0x7   : > { %p42_p0 = scmp.ne.s32.totalorder %s2645_s19, %s2641_s18  ;;  %p3612_p1 = scmp.eq.s32.totalorder %s2719_s22, 0 }
   0x8   : > { %p156_p3 = scmp.eq.s32.totalorder %s1937_s23, 3  ;;  %p1938_p5 = scmp.ge.s32.totalorder %s2653_s21, 1 }
   0x9   : > { %p2728_p4 = por %p3612_p1, %p42_p0  ;;  %p163_p7 = scmp.lt.s32.totalorder %s2653_s21, 5 }
   0xa   : > { %p2733_p6 = por %p156_p3, %p42_p0  ;;  %s2655_s27 = smov [#allocation6]  }
   0xb   : > { %s3638_s24 = scalar_select %p2728_p4, 1, 0 }
   0xc   : > { %s3639_s25 = scalar_select %p2733_p6, 1, 0 }
   0xd   : > { %p2738_p8 = pnand %p1938_p5, %p163_p7  ;;  %s181_s28 = sshll.u32 %s2655_s27, 4  ;;  %s182_s28 = int_to_ptr.vmem [resolvable:$true] %s181_s28 }
   0xe   : > { %s2751_s30 = sadd.s32 1, %s2653_s21   ;;  %s29_s6 = sadd.s32 1, %s2649_s20 }
   0xf   : > { %s3640_s26 = scalar_select %p2738_p8, 1, 0 }
  0x10   : > { %p2214_p9 = pneg %p2738_p8  ;;  %s26_s7 = ssub.s32 %s2653_s21, %s2751_s30 }
  0x11   : > { %s2525_s10 = scalar_lea.hbm %s3609_s3, 512 }
  0x12   : > { %p2746_p10 = pnand %p2214_p9, %p3612_p1  ;;  %p2526_p11 = scmp.ne.s32.totalorder %s3609_s3, %s2525_s10 }
  0x13   : > { %p2532_p3 = scmp.lt.u32.totalorder %s2525_s10, %s3609_s3 }
  0x14   : > { %p2527_p12 = pneg %p2746_p10 }
  0x16   : > { %p2528_p13 = pnand %p2527_p12, %p2526_p11 }
  0x18   : > { %p2529_p0 = pneg %p2528_p13 }
  0x1a   : > { %p2534_p5 = pnand %p2532_p3, %p2529_p0 }
  0x1c   : > { %2537 = shalt.err (!%p2534_p5)
}
  0x1d   : > { %s2538_s15 = scalar_lea.vmem %s182_s28, 512  ;;  %p2546_p2 = scmp.lt.s32.totalorder %s182_s28, %s182_s28 }
  0x1e   : > { %p2539_p7 = scmp.ne.s32.totalorder %s182_s28, %s2538_s15  ;;  %p2547_p6 = scmp.lt.s32.totalorder %s2538_s15, %s2538_s15 }
  0x20   : > { %p2541_p9 = pnand %p2539_p7, %p2527_p12  ;;  %p2548_p4 = por %p2547_p6, %p2546_p2 }
  0x22   : > { %p2542_p1 = pneg %p2541_p9 }
  0x24   : > { %p2549_p8 = pnand %p2548_p4, %p2542_p1 }
  0x26   : > { %2552 = shalt.err (!%p2549_p8)
}
  0x27   : > { %s2656_s16 = smov 64   ;;  %s2657_s17 = smov 4  }
  0x28   : > { %2217 = dma.hbm_to_vmem [thread:$0]  (!%p2746_p10), %s3609_s3, 512, %s182_s28, [#allocation7], %s2656_s16, %s2656_s16, %s2657_s17  }
  0x29   : > { %p27_p11 = scmp.eq.s32.totalorder %s26_s7, 0  ;;  %p36_p2 = scmp.ne.s32.totalorder %s2649_s20, %s2645_s19 }
  0x2a   : > { %p37_p1 = scmp.eq.s32.totalorder %s2653_s21, 0  ;;  %p2227_p4 = scmp.lt.s32.totalorder %s2653_s21, 4 }
  0x2b   : > { %s2777_s8 = scalar_select %p27_p11, %s2649_s20, %s29_s6  }
  0x2c   : > { %p38_p6 = por %p37_p1, %p36_p2  ;;  %p3642_p8 = scmp.eq.s32.totalorder %s2719_s22, 3 }
  0x2d   : > { %s198_s10 = sand.u32 1, %s2649_s20   ;;  %s2016_s11 = sshll.u32 %s2653_s21, 12 }
  0x2e   : > { %p2781_p12 = por %p3642_p8, %p36_p2  ;;  %s1941_s12 = sshll.u32 %s198_s10, 8 }
  0x2f   : > { %s2790_s14 = scalar_lea.hbm %s3606_s0, %s2016_s11  ;;  %s202_s28 = scalar_lea.vmem [#allocation3], %s1941_s12 }
  0x30   : > { %s209_s6 = sshll.u32 %s202_s28, 4  ;;  %p2792_p10 = pnand %p2227_p4, %p38_p6  ;;  %s2796_s6 = int_to_ptr.vmem [resolvable:$true] %s209_s6 }
  0x31   : > { %s2798_s15 = scalar_lea.sflag [#allocation4], %s198_s10  ;;  %s2553_s16 = scalar_lea.hbm %s2790_s14, 4096 }
  0x32   : > { %p2554_p13 = scmp.ne.s32.totalorder %s2790_s14, %s2553_s16  ;;  %p2555_p0 = pneg %p2792_p10 }
  0x33   : > { %s2558_s27 = scalar_lea.hbm %s3606_s0, 16384  ;;  %p2559_p7 = scmp.lt.u32.totalorder %s2790_s14, %s3606_s0 }
  0x34   : > { %p2556_p3 = pnand %p2555_p0, %p2554_p13  ;;  %p2560_p9 = scmp.lt.u32.totalorder %s2558_s27, %s2553_s16 }
  0x35   : > { %p2562_p2 = scmp.lt.u32.totalorder %s2553_s16, %s2790_s14 }
  0x36   : > { %p2557_p5 = pneg %p2556_p3  ;;  %p2561_p11 = por %p2560_p9, %p2559_p7 }
  0x38   : > { %p2563_p1 = por %p2562_p2, %p2561_p11 }
  0x3a   : > { %p2564_p4 = pnand %p2563_p1, %p2557_p5 }
  0x3c   : > { %2567 = shalt.err (!%p2564_p4)
}
  0x3d   : > { %s2568_s10 = scalar_lea.vmem %s2796_s6, 4096  ;;  %s2658_s29 = smov [#allocation3]  }
  0x3e   : > { %p2569_p6 = scmp.ne.s32.totalorder %s2796_s6, %s2568_s10  ;;  %s2573_s13 = sshll.u32 %s2658_s29, 4  ;;  %s2574_s13 = int_to_ptr.vmem [resolvable:$false] %s2573_s13 }
  0x3f   : > { %s2575_s28 = scalar_lea.vmem %s2574_s13, 8192  ;;  %p2576_p3 = scmp.lt.s32.totalorder %s2796_s6, %s2574_s13 }
  0x40   : > { %p2571_p8 = pnand %p2569_p6, %p2555_p0  ;;  %p2577_p7 = scmp.lt.s32.totalorder %s2575_s28, %s2568_s10 }
  0x42   : > { %p2572_p13 = pneg %p2571_p8  ;;  %p2578_p9 = por %p2577_p7, %p2576_p3 }
  0x44   : > { %p2579_p11 = pnand %p2578_p9, %p2572_p13 }
  0x46   : > { %2582 = shalt.err (!%p2579_p11)
}
  0x47   : > { %s2659_s16 = smov 128   ;;  %s2660_s17 = smov 8  }
  0x48   : > { %2221 = dma.hbm_to_vmem [thread:$0]  (!%p2792_p10), %s2790_s14, 4096, %s2796_s6, %s2798_s15, %s2659_s16, %s2659_s16, %s2660_s17  }
  0x49   : > { %p3645_p0 = scmp.ne.s32.totalorder %s3640_s26, 0 }
  0x4a   : > { %s2829_s23 = sand.u32 (!%p3645_p0), 1, %s2645_s19   ;;  %p3646_p5 = scmp.ne.s32.totalorder (!%p3645_p0), %s3638_s24, 0 }
  0x4b   : > { %221 = sbr.rel (%p3645_p0) target bundleno = 1001 (0x3e9), region = 40  ;;  %s1945_s27 = sshll.u32 (!%p3645_p0), %s2829_s23, 8 }
  0x4c   : > { %s224_s11 = scalar_lea.sflag (!%p3645_p0), [#allocation4], %s2829_s23  ;;  %s2835_s12 = scalar_lea.vmem (!%p3645_p0), [#allocation3], %s1945_s27 }
  0x52   : > { %2628 = dma.done.wait (%p3646_p5), %s224_s11, 4096  }
  0x53   : > { %2630 = vsyncadd (%p3646_p5), %s224_s11, 4294963200  ;;  %p3647_p10 = scmp.eq.s32.totalorder %s2719_s22, 0 }
  0x55   : > { %2632 = dma.done.wait (%p3647_p10), [#allocation7], 512   ;;  %p3648_p2 = pmov %p3647_p10 }
  0x56   : > { %v2513_v0 = vld [vmem:[%s3607_s1] sm:$0xff]   ;;  %v2514_v1 = vld [vmem:[%s3607_s1 + $0x8] sm:$0xff]   ;;  %v2515_v2 = vld [vmem:[%s3607_s1 + $0x10] sm:$0xff]   ;;  %vm346_vm0 = vcmask 523264   ;;  %vm589_vm1 = vcmask 130048   ;;  %vm592_vm2 = vcmask 122880  }
  0x57   : > { %2634 = vsyncadd (%p3648_p2), [#allocation7], 4294966784  ;;  %2078 = vmatprep.subr.bf16.mxu0 %v2513_v0  ;;  %2198 = vmatprep.subr.bf16.mxu1 %v2513_v0  ;;  %v262_v3 = vld [vmem:[%s2835_s12] sm:$0xff]  ;;  %v263_v4 = vld [vmem:[%s2835_s12 + $0x8] sm:$0xff]  ;;  %v2661_v52 = vmov 0.0   ;;  %s2662_s11 = smov 32  }
  0x58   : > { %2079 = vmatpush3.bf16.msra.mxu0 %v2513_v0  ;;  %2202 = vmatpush3.bf16.msra.mxu1 %v2513_v0  ;;  %v294_v5 = vpack.c.bf16 %v263_v4, %v262_v3  ;;  %v278_v6 = vld [vmem:[%s2835_s12 + $0x80] sm:$0xff]  ;;  %v279_v7 = vld [vmem:[%s2835_s12 + $0x88] sm:$0xff]  ;;  %v264_v10 = vld [vmem:[%s2835_s12 + $0x10] sm:$0xff]  ;;  %595 = vst.msk [vmem:[#allocation2 + $0x28] sm:$0x1] %vm592_vm2, %v2661_v52  ;;  %s2664_s26 = smov 48  }
  0x59   : > { %2080 = vmatprep.subr.bf16.mxu0 %v2514_v1  ;;  %2199 = vmatprep.subr.bf16.mxu1 %v2514_v1  ;;  %v302_v8 = vpack.c.bf16 %v279_v7, %v278_v6  ;;  %v2516_v9 = vld [vmem:[%s3607_s1 + $0x18] sm:$0xff]   ;;  %v265_v11 = vld [vmem:[%s2835_s12 + $0x18] sm:$0xff]  ;;  %v280_v12 = vld [vmem:[%s2835_s12 + $0x90] sm:$0xff]  ;;  %590 = vst.msk [vmem:[#allocation2 + $0x180] sm:$0xff] %vm589_vm1, %v2661_v52  ;;  %vm1156_vm3 = vcmask 261120   ;;  %vm1189_vm4 = vcmask 392192  }
  0x5a   : > { %2086 = vmatprep.mubr.msk.bf16.mxu0 %vm346_vm0, %v294_v5  ;;  %v281_v13 = vld [vmem:[%s2835_s12 + $0x98] sm:$0xff]  ;;  %v266_v14 = vld [vmem:[%s2835_s12 + $0x20] sm:$0xff]  ;;  %v267_v15 = vld [vmem:[%s2835_s12 + $0x28] sm:$0xff]  ;;  %v295_v18 = vpack.c.bf16 %v265_v11, %v264_v10  ;;  %591 = vst.msk [vmem:[#allocation2 + $0x188] sm:$0xff] %vm589_vm1, %v2661_v52  ;;  %s3494_s17 = scalar_lea.vmem [#allocation8], %s1945_s27  ;;  %s2017_s27 = sshll.u32 %s2719_s22, 12 }
  0x5b   : > { %2102 = vmatprep.mubr.msk.bf16.mxu1 %vm346_vm0, %v302_v8  ;;  %v282_v16 = vld [vmem:[%s2835_s12 + $0xa0] sm:$0xff]  ;;  %v283_v17 = vld [vmem:[%s2835_s12 + $0xa8] sm:$0xff]  ;;  %v303_v19 = vpack.c.bf16 %v281_v13, %v280_v12  ;;  %v296_v20 = vpack.c.bf16 %v267_v15, %v266_v14  ;;  %v268_v22 = vld [vmem:[%s2835_s12 + $0x30] sm:$0xff]  ;;  %593 = vst.msk [vmem:[#allocation2 + $0x190] sm:$0x1] %vm592_vm2, %v2661_v52  ;;  %s3558_s14 = scalar_lea.hbm %s3611_s5, %s2017_s27  ;;  %s1841_s22 = scalar_lea.sflag [#allocation5], %s2829_s23 }
  0x5c   : > { %2081 = vmatpush3.bf16.msra.mxu0 %v2514_v1  ;;  %2203 = vmatpush3.bf16.msra.mxu1 %v2514_v1  ;;  %v304_v21 = vpack.c.bf16 %v283_v17, %v282_v16  ;;  %v269_v23 = vld [vmem:[%s2835_s12 + $0x38] sm:$0xff]  ;;  %v284_v24 = vld [vmem:[%s2835_s12 + $0xb0] sm:$0xff]  ;;  %v270_v26 = vld [vmem:[%s2835_s12 + $0x40] sm:$0xff]  ;;  %594 = vst.msk [vmem:[#allocation2 + $0x10] sm:$0x1] %vm592_vm2, %v2661_v52  ;;  %s2665_s7 = smov [#allocation8]  }
  0x5d   : > { %2082 = vmatprep.subr.bf16.mxu0 %v2515_v2  ;;  %2200 = vmatprep.subr.bf16.mxu1 %v2515_v2  ;;  %v285_v25 = vld [vmem:[%s2835_s12 + $0xb8] sm:$0xff]  ;;  %v271_v27 = vld [vmem:[%s2835_s12 + $0x48] sm:$0xff]  ;;  %v286_v28 = vld [vmem:[%s2835_s12 + $0xc0] sm:$0xff]  ;;  %v297_v30 = vpack.c.bf16 %v269_v23, %v268_v22  ;;  %596 = vst.msk [vmem:[#allocation2 + $0x40] sm:$0x1] %vm592_vm2, %v2661_v52  ;;  %s2587_s24 = sshll.u32 %s2665_s7, 4  ;;  %s2588_s24 = int_to_ptr.vmem [resolvable:$false] %s2587_s24 }
  0x5e   : > { %v287_v29 = vld [vmem:[%s2835_s12 + $0xc8] sm:$0xff]  ;;  %v305_v31 = vpack.c.bf16 %v285_v25, %v284_v24  ;;  %v298_v32 = vpack.c.bf16 %v271_v27, %v270_v26  ;;  %v272_v34 = vld [vmem:[%s2835_s12 + $0x50] sm:$0xff]  ;;  %v273_v35 = vld [vmem:[%s2835_s12 + $0x58] sm:$0xff]  ;;  %597 = vst.msk [vmem:[#allocation2 + $0x58] sm:$0x1] %vm592_vm2, %v2661_v52  ;;  %s2589_s15 = scalar_lea.vmem %s2588_s24, 8192 }
  0x5f   : > { %v306_v33 = vpack.c.bf16 %v287_v29, %v286_v28  ;;  %v274_v36 = vld [vmem:[%s2835_s12 + $0x60] sm:$0xff]  ;;  %v288_v37 = vld [vmem:[%s2835_s12 + $0xd0] sm:$0xff]  ;;  %v289_v38 = vld [vmem:[%s2835_s12 + $0xd8] sm:$0xff]  ;;  %v299_v42 = vpack.c.bf16 %v273_v35, %v272_v34  ;;  %598 = vst.msk [vmem:[#allocation2 + $0x70] sm:$0x1] %vm592_vm2, %v2661_v52 }
  0x60   : > { %2083 = vmatpush3.bf16.msra.mxu0 %v2515_v2  ;;  %2204 = vmatpush3.bf16.msra.mxu1 %v2515_v2  ;;  %v275_v39 = vld [vmem:[%s2835_s12 + $0x68] sm:$0xff]  ;;  %v290_v40 = vld [vmem:[%s2835_s12 + $0xe0] sm:$0xff]  ;;  %v307_v43 = vpack.c.bf16 %v289_v38, %v288_v37  ;;  %v276_v46 = vld [vmem:[%s2835_s12 + $0x70] sm:$0xff]  ;;  %599 = vst.msk [vmem:[#allocation2 + $0x88] sm:$0x1] %vm592_vm2, %v2661_v52 }
  0x61   : > { %2084 = vmatprep.subr.bf16.mxu0 %v2516_v9  ;;  %2201 = vmatprep.subr.bf16.mxu1 %v2516_v9  ;;  %v291_v41 = vld [vmem:[%s2835_s12 + $0xe8] sm:$0xff]  ;;  %v300_v44 = vpack.c.bf16 %v275_v39, %v274_v36  ;;  %v277_v47 = vld [vmem:[%s2835_s12 + $0x78] sm:$0xff]  ;;  %v292_v48 = vld [vmem:[%s2835_s12 + $0xf0] sm:$0xff]  ;;  %600 = vst.msk [vmem:[#allocation2 + $0xa0] sm:$0x1] %vm592_vm2, %v2661_v52 }
  0x62   : > { %v308_v45 = vpack.c.bf16 %v291_v41, %v290_v40  ;;  %v293_v49 = vld [vmem:[%s2835_s12 + $0xf8] sm:$0xff]  ;;  %v301_v50 = vpack.c.bf16 %v277_v47, %v276_v46  ;;  %601 = vst.msk [vmem:[#allocation2 + $0xb8] sm:$0x1] %vm592_vm2, %v2661_v52  ;;  %602 = vst.msk [vmem:[#allocation2 + $0xd0] sm:$0x1] %vm592_vm2, %v2661_v52  ;;  %v2517_v34 = vld [vmem:[%s3608_s2] sm:$0xff]  }
  0x63   : > { %v309_v51 = vpack.c.bf16 %v293_v49, %v292_v48  ;;  %603 = vst.msk [vmem:[#allocation2 + $0xe8] sm:$0x1] %vm592_vm2, %v2661_v52  ;;  %604 = vst.msk [vmem:[#allocation2 + $0x100] sm:$0x1] %vm592_vm2, %v2661_v52  ;;  %v2928_v53 = vld [vmem:[%s3610_s4] ss:$0 sm:$0xff] }
  0x64   : > { %2085 = vmatpush3.bf16.msra.mxu0 %v2516_v9  ;;  %2205 = vmatpush3.bf16.msra.mxu1 %v2516_v9  ;;  %605 = vst.msk [vmem:[#allocation2 + $0x118] sm:$0x1] %vm592_vm2, %v2661_v52  ;;  %606 = vst.msk [vmem:[#allocation2 + $0x130] sm:$0x1] %vm592_vm2, %v2661_v52  ;;  %s2663_s12 = smov 16  }
  0x65   : > { %607 = vst.msk [vmem:[#allocation2 + $0x148] sm:$0x1] %vm592_vm2, %v2661_v52  ;;  %608 = vst.msk [vmem:[#allocation2 + $0x160] sm:$0x1] %vm592_vm2, %v2661_v52  ;;  %2118 = vmatprep.subr.bf16.mxu1 %v2517_v34 }
  0x66   : > { %609 = vst.msk [vmem:[#allocation2 + $0x178] sm:$0x1] %vm592_vm2, %v2661_v52  ;;  %610 = vst.msk [vmem:[#allocation2 + $0x190] sm:$0x1] %vm592_vm2, %v2661_v52 }
  0x67   : > { %2087 = vmatmul.mubr.msk.bf16.vlgmr.msra.gmra.mrb[0].mxu0 %vm346_vm0, %v295_v18  ;;  %2103 = vmatmul.mubr.msk.bf16.vlgmr.msra.gmra.mrb[0].mxu1 %vm346_vm0, %v303_v19 }
  0x68   : > { %2090 = vmatprep.mubr.msk.bf16.mxu0 %vm346_vm0, %v296_v20  ;;  %2106 = vmatprep.mubr.msk.bf16.mxu1 %vm346_vm0, %v304_v21 }
  0x69   : > { %2119 = vmatpush3.bf16.msra.mxu1 %v2517_v34 }
  0x6f   : > { %2091 = vmatmul.mubr.msk.bf16.gmra.mrb[4].mxu0 %vm346_vm0, %v297_v30  ;;  %2107 = vmatmul.mubr.msk.bf16.gmra.mrb[4].mxu1 %vm346_vm0, %v305_v31 }
  0x70   : > { %2094 = vmatprep.mubr.msk.bf16.mxu0 %vm346_vm0, %v298_v32  ;;  %2110 = vmatprep.mubr.msk.bf16.mxu1 %vm346_vm0, %v306_v33 }
  0x77   : > { %2095 = vmatmul.mubr.msk.bf16.gmra.mrb[8].mxu0 %vm346_vm0, %v299_v42  ;;  %2111 = vmatmul.mubr.msk.bf16.gmra.mrb[8].mxu1 %vm346_vm0, %v307_v43 }
  0x78   : > { %2098 = vmatprep.mubr.msk.bf16.mxu0 %vm346_vm0, %v300_v44  ;;  %2114 = vmatprep.mubr.msk.bf16.mxu1 %vm346_vm0, %v308_v45 }
  0x7f   : > { %2099 = vmatmul.mubr.msk.bf16.gmra.mrb[12].mxu0 %vm346_vm0, %v301_v50  ;;  %2115 = vmatmul.mubr.msk.bf16.gmra.mrb[12].mxu1 %vm346_vm0, %v309_v51 }
 0x13a   : > { %v2088_v54 = vpop.f32.mrb[0].mxu0  ;;  %v2104_v55 = vpop.f32.mrb[0].mxu1 }
 0x13b   : > { %v2931_v56 = vadd.f32 %v2088_v54, %v2928_v53  ;;  %v429_v57 = vpop.f32.mrb[1].mxu0  ;;  %v2934_v58 = vadd.f32 %v2104_v55, %v2928_v53  ;;  %v493_v59 = vpop.f32.mrb[1].mxu1 }
 0x13c   : > { %v2937_v60 = vadd.f32 %v2928_v53, %v429_v57  ;;  %v2089_v61 = vpop.f32.mrb[2].mxu0  ;;  %v2940_v62 = vadd.f32 %v2928_v53, %v493_v59  ;;  %v2105_v63 = vpop.f32.mrb[2].mxu1 }
 0x13d   : > { %v558_v0 = vmax.f32 %v2931_v56, 0.0  ;;  %v2944_v1 = vadd.f32 %v2089_v61, %v2928_v53  ;;  %v3623_v2 = vmax.f32 %v2934_v58, 0.0  ;;  %v432_v3 = vpop.f32.mrb[3].mxu0  ;;  %v2948_v4 = vadd.f32 %v2105_v63, %v2928_v53  ;;  %v496_v5 = vpop.f32.mrb[3].mxu1 }
 0x13e   : > { %v556_v6 = vmax.f32 %v2937_v60, 0.0  ;;  %v2952_v7 = vadd.f32 %v2928_v53, %v432_v3  ;;  %v3633_v8 = vmax.f32 %v2940_v62, 0.0  ;;  %v2956_v9 = vadd.f32 %v2928_v53, %v496_v5 }
 0x13f   : > { %613 = vst.msk [vmem:[#allocation2 + $0x18] sm:$0xff] %vm589_vm1, %v558_v0  ;;  %v559_v10 = vmax.f32 %v2944_v1, 0.0  ;;  %629 = vst.msk [vmem:[#allocation2 + $0xd8] sm:$0xff] %vm589_vm1, %v3623_v2  ;;  %v3627_v11 = vmax.f32 %v2948_v4, 0.0 }
 0x140   : > { %611 = vst.msk [vmem:[#allocation2] sm:$0xff] %vm589_vm1, %v556_v6  ;;  %v557_v12 = vmax.f32 %v2952_v7, 0.0  ;;  %627 = vst.msk [vmem:[#allocation2 + $0xc0] sm:$0xff] %vm589_vm1, %v3633_v8  ;;  %v3634_v13 = vmax.f32 %v2956_v9, 0.0 }
 0x141   : > { %614 = vst.msk [vmem:[#allocation2 + $0x20] sm:$0xff] %vm589_vm1, %v559_v10  ;;  %630 = vst.msk [vmem:[#allocation2 + $0xe0] sm:$0xff] %vm589_vm1, %v3627_v11 }
 0x142   : > { %612 = vst.msk [vmem:[#allocation2 + $0x8] sm:$0xff] %vm589_vm1, %v557_v12  ;;  %628 = vst.msk [vmem:[#allocation2 + $0xc8] sm:$0xff] %vm589_vm1, %v3634_v13  ;;  %v2092_v14 = vpop.f32.mrb[4].mxu0  ;;  %v2108_v15 = vpop.f32.mrb[4].mxu1 }
 0x143   : > { %v2987_v16 = vadd.f32 %v2092_v14, %v2928_v53  ;;  %v445_v17 = vpop.f32.mrb[5].mxu0  ;;  %v2990_v18 = vadd.f32 %v2108_v15, %v2928_v53  ;;  %v509_v19 = vpop.f32.mrb[5].mxu1 }
 0x144   : > { %v2993_v20 = vadd.f32 %v2928_v53, %v445_v17  ;;  %v2093_v21 = vpop.f32.mrb[6].mxu0  ;;  %v2996_v22 = vadd.f32 %v2928_v53, %v509_v19  ;;  %v2109_v23 = vpop.f32.mrb[6].mxu1 }
 0x145   : > { %v562_v24 = vmax.f32 %v2987_v16, 0.0  ;;  %v3000_v25 = vadd.f32 %v2093_v21, %v2928_v53  ;;  %v448_v26 = vpop.f32.mrb[7].mxu0  ;;  %v3619_v27 = vmax.f32 %v2990_v18, 0.0  ;;  %v3004_v28 = vadd.f32 %v2109_v23, %v2928_v53  ;;  %v512_v29 = vpop.f32.mrb[7].mxu1 }
 0x146   : > { %v560_v30 = vmax.f32 %v2993_v20, 0.0  ;;  %v3008_v31 = vadd.f32 %v2928_v53, %v448_v26  ;;  %v3621_v32 = vmax.f32 %v2996_v22, 0.0  ;;  %v3012_v33 = vadd.f32 %v2928_v53, %v512_v29  ;;  %v676_v36 = vld [vmem:[#allocation2 + $0x18] sm:$0xff] }
 0x147   : > { %617 = vst.msk [vmem:[#allocation2 + $0x48] sm:$0xff] %vm589_vm1, %v562_v24  ;;  %v563_v35 = vmax.f32 %v3000_v25, 0.0  ;;  %633 = vst.msk [vmem:[#allocation2 + $0x108] sm:$0xff] %vm589_vm1, %v3619_v27  ;;  %v3620_v37 = vmax.f32 %v3004_v28, 0.0  ;;  %v692_v63 = vld [vmem:[#allocation2 + $0xd8] sm:$0xff]  ;;  %v690_v19 = vld [vmem:[#allocation2 + $0xc0] sm:$0xff] }
 0x148   : > { %615 = vst.msk [vmem:[#allocation2 + $0x30] sm:$0xff] %vm589_vm1, %v560_v30  ;;  %v677_v38 = vld [vmem:[#allocation2 + $0x20] sm:$0xff]  ;;  %v561_v41 = vmax.f32 %v3008_v31, 0.0  ;;  %631 = vst.msk [vmem:[#allocation2 + $0xf0] sm:$0xff] %vm589_vm1, %v3621_v32  ;;  %v3622_v42 = vmax.f32 %v3012_v33, 0.0 }
 0x149   : > { %v645_v39 = vld [vmem:[#allocation2 + $0x19] sm:$0xff]  ;;  %v646_v40 = vld [vmem:[#allocation2 + $0x21] sm:$0xff]  ;;  %618 = vst.msk [vmem:[#allocation2 + $0x50] sm:$0xff] %vm589_vm1, %v563_v35  ;;  %v2278_v43 = vpack.i.bf16 %v677_v38, %v676_v36  ;;  %634 = vst.msk [vmem:[#allocation2 + $0x110] sm:$0xff] %vm589_vm1, %v3620_v37 }
 0x14a   : > { %v2273_v44 = vpack.i.bf16 %v646_v40, %v645_v39  ;;  %v661_v45 = vld [vmem:[#allocation2 + $0xd9] sm:$0xff]  ;;  %v662_v46 = vld [vmem:[#allocation2 + $0xe1] sm:$0xff]  ;;  %616 = vst.msk [vmem:[#allocation2 + $0x38] sm:$0xff] %vm589_vm1, %v561_v41  ;;  %632 = vst.msk [vmem:[#allocation2 + $0xf8] sm:$0xff] %vm589_vm1, %v3622_v42  ;;  %v2096_v47 = vpop.f32.mrb[8].mxu0  ;;  %v2112_v48 = vpop.f32.mrb[8].mxu1 }
 0x14b   : > { %2279 = vrot.lane.b32.xlu1 %v2278_v43, %s2662_s11  ;;  %v3047_v49 = vpack.i.bf16 %v662_v46, %v661_v45  ;;  %v3050_v50 = vadd.f32 %v2096_v47, %v2928_v53  ;;  %v461_v51 = vpop.f32.mrb[9].mxu0  ;;  %v525_v52 = vpop.f32.mrb[9].mxu1  ;;  %v3056_v57 = vadd.f32 %v2112_v48, %v2928_v53  ;;  %v691_v21 = vld [vmem:[#allocation2 + $0xc8] sm:$0xff]  ;;  %v693_v23 = vld [vmem:[#allocation2 + $0xe0] sm:$0xff] }
 0x14c   : > { %2274 = vrot.lane.b32.xlu0 %v2273_v44, %s2663_s12  ;;  %v3053_v54 = vadd.f32 %v2928_v53, %v461_v51  ;;  %v2097_v55 = vpop.f32.mrb[10].mxu0  ;;  %v3059_v59 = vadd.f32 %v2928_v53, %v525_v52  ;;  %v2113_v61 = vpop.f32.mrb[10].mxu1  ;;  %v2518_v43 = vld [vmem:[%s3608_s2 + $0x8] sm:$0xff]   ;;  %v2308_v45 = vpack.i.bf16 %v691_v21, %v690_v19  ;;  %v2293_v46 = vpack.i.bf16 %v693_v23, %v692_v63 }
 0x14d   : > { %v3635_v3 = vmax.f32 %v3050_v50, 0.0  ;;  %v3063_v5 = vadd.f32 %v2097_v55, %v2928_v53  ;;  %v464_v14 = vpop.f32.mrb[11].mxu0  ;;  %v3066_v15 = vadd.f32 %v2113_v61, %v2928_v53  ;;  %v528_v17 = vpop.f32.mrb[11].mxu1  ;;  %v3615_v34 = vmax.f32 %v3056_v57, 0.0  ;;  %2120 = vmatprep.subr.bf16.mxu1 %v2518_v43  ;;  %v722_v48 = vld [vmem:[#allocation2 + $0xc1] sm:$0xff]  ;;  %v723_v51 = vld [vmem:[#allocation2 + $0xc9] sm:$0xff] }
 0x14e   : > { %v3637_v26 = vmax.f32 %v3053_v54, 0.0  ;;  %v3070_v29 = vadd.f32 %v2928_v53, %v464_v14  ;;  %v3617_v36 = vmax.f32 %v3059_v59, 0.0  ;;  %v3083_v40 = vadd.f32 %v2928_v53, %v528_v17  ;;  %2121 = vmatpush3.bf16.msra.mxu1 %v2518_v43  ;;  %v643_v27 = vld [vmem:[#allocation2 + $0x1] sm:$0xff]  ;;  %v644_v37 = vld [vmem:[#allocation2 + $0x9] sm:$0xff] }
 0x14f   : > { %2289 = vrot.lane.b32.xlu1 %v3047_v49, %s2663_s12  ;;  %621 = vst.msk [vmem:[#allocation2 + $0x78] sm:$0xff] %vm589_vm1, %v3635_v3  ;;  %v3636_v38 = vmax.f32 %v3063_v5, 0.0  ;;  %v3616_v39 = vmax.f32 %v3066_v15, 0.0  ;;  %637 = vst.msk [vmem:[#allocation2 + $0x138] sm:$0xff] %vm589_vm1, %v3615_v34  ;;  %v2313_v34 = vpack.i.bf16 %v723_v51, %v722_v48  ;;  %v694_v11 = vld [vmem:[#allocation2 + $0xf0] sm:$0xff] }
 0x150   : > { %2284 = vrot.lane.b32.xlu0 %v2273_v44, %s2664_s26  ;;  %619 = vst.msk [vmem:[#allocation2 + $0x60] sm:$0xff] %vm589_vm1, %v3637_v26  ;;  %v565_v44 = vmax.f32 %v3070_v29, 0.0  ;;  %635 = vst.msk [vmem:[#allocation2 + $0x120] sm:$0xff] %vm589_vm1, %v3617_v36  ;;  %v3618_v47 = vmax.f32 %v3083_v40, 0.0  ;;  %v649_v17 = vld [vmem:[#allocation2 + $0x49] sm:$0xff]  ;;  %v650_v19 = vld [vmem:[#allocation2 + $0x51] sm:$0xff] }
 0x151   : > { %622 = vst.msk [vmem:[#allocation2 + $0x80] sm:$0xff] %vm589_vm1, %v3636_v38  ;;  %638 = vst.msk [vmem:[#allocation2 + $0x140] sm:$0xff] %vm589_vm1, %v3616_v39  ;;  %v2323_v51 = vpack.i.bf16 %v650_v19, %v649_v17  ;;  %v678_v17 = vld [vmem:[#allocation2 + $0x30] sm:$0xff]  ;;  %v679_v19 = vld [vmem:[#allocation2 + $0x38] sm:$0xff] }
 0x152   : > { %620 = vst.msk [vmem:[#allocation2 + $0x68] sm:$0xff] %vm589_vm1, %v565_v44  ;;  %v2100_v52 = vpop.f32.mrb[12].mxu0  ;;  %v2116_v55 = vpop.f32.mrb[12].mxu1  ;;  %636 = vst.msk [vmem:[#allocation2 + $0x128] sm:$0xff] %vm589_vm1, %v3618_v47 }
 0x153   : > { %2309 = vrot.lane.b32.xlu1 %v2308_v45, %s2662_s11  ;;  %v3111_v61 = vadd.f32 %v2100_v52, %v2928_v53  ;;  %v477_v63 = vpop.f32.mrb[13].mxu0  ;;  %v541_v14 = vpop.f32.mrb[13].mxu1  ;;  %v3120_v43 = vadd.f32 %v2116_v55, %v2928_v53  ;;  %v2519_v52 = vld [vmem:[%s3608_s2 + $0x10] sm:$0xff]  }
 0x154   : > { %2294 = vrot.lane.b32.xlu0 %v2293_v46, %s2662_s11  ;;  %v3117_v21 = vadd.f32 %v2928_v53, %v477_v63  ;;  %v2101_v23 = vpop.f32.mrb[14].mxu0  ;;  %v3123_v45 = vadd.f32 %v2928_v53, %v541_v14  ;;  %v2117_v46 = vpop.f32.mrb[14].mxu1  ;;  %2122 = vmatprep.subr.bf16.mxu1 %v2519_v52 }
 0x155   : > { %v3631_v39 = vmax.f32 %v3111_v61, 0.0  ;;  %v3130_v36 = vadd.f32 %v2101_v23, %v2928_v53  ;;  %v480_v63 = vpop.f32.mrb[15].mxu0  ;;  %v3133_v47 = vadd.f32 %v2117_v46, %v2928_v53  ;;  %v544_v55 = vpop.f32.mrb[15].mxu1  ;;  %v3624_v42 = vmax.f32 %v3120_v43, 0.0  ;;  %2123 = vmatpush3.bf16.msra.mxu1 %v2519_v52  ;;  %v680_v52 = vld [vmem:[#allocation2 + $0x48] sm:$0xff] }
 0x156   : > { %v3628_v14 = vmax.f32 %v3117_v21, 0.0  ;;  %v3137_v32 = vadd.f32 %v2928_v53, %v480_v63  ;;  %v3626_v48 = vmax.f32 %v3123_v45, 0.0  ;;  %v3150_v63 = vadd.f32 %v2928_v53, %v544_v55  ;;  %v710_v55 = vld [vmem:[#allocation2 + $0x31] sm:$0xff] }
 0x157   : > { %2314 = vrot.lane.b32.xlu1 %v2313_v34, %s2664_s26  ;;  %625 = vst.msk [vmem:[#allocation2 + $0xa8] sm:$0xff] %vm589_vm1, %v3631_v39  ;;  %v3632_v23 = vmax.f32 %v3130_v36, 0.0  ;;  %v3625_v46 = vmax.f32 %v3133_v47, 0.0  ;;  %641 = vst.msk [vmem:[#allocation2 + $0x168] sm:$0xff] %vm589_vm1, %v3624_v42  ;;  %v711_v42 = vld [vmem:[#allocation2 + $0x39] sm:$0xff] }
 0x158   : > { %2299 = vrot.lane.b32.xlu0 %v3047_v49, %s2664_s26  ;;  %623 = vst.msk [vmem:[#allocation2 + $0x90] sm:$0xff] %vm589_vm1, %v3628_v14  ;;  %v3630_v2 = vmax.f32 %v3137_v32, 0.0  ;;  %639 = vst.msk [vmem:[#allocation2 + $0x150] sm:$0xff] %vm589_vm1, %v3626_v48  ;;  %v2303_v49 = vpack.i.bf16 %v644_v37, %v643_v27  ;;  %v3629_v53 = vmax.f32 %v3150_v63, 0.0  ;;  %v2520_v27 = vld [vmem:[%s3608_s2 + $0x18] sm:$0xff]   ;;  %v2338_v37 = vpack.i.bf16 %v679_v19, %v678_v17  ;;  %v654_v17 = vld [vmem:[#allocation2 + $0x81] sm:$0xff] }
 0x159   : > { %626 = vst.msk [vmem:[#allocation2 + $0xb0] sm:$0xff] %vm589_vm1, %v3632_v23  ;;  %642 = vst.msk [vmem:[#allocation2 + $0x170] sm:$0xff] %vm589_vm1, %v3625_v46  ;;  %v681_v46 = vld [vmem:[#allocation2 + $0x50] sm:$0xff]  ;;  %2124 = vmatprep.subr.bf16.mxu1 %v2520_v27  ;;  %v695_v14 = vld [vmem:[#allocation2 + $0xf8] sm:$0xff] }
 0x15a   : > { %624 = vst.msk [vmem:[#allocation2 + $0x98] sm:$0xff] %vm589_vm1, %v3630_v2  ;;  %640 = vst.msk [vmem:[#allocation2 + $0x158] sm:$0xff] %vm589_vm1, %v3629_v53  ;;  %2125 = vmatpush3.bf16.msra.mxu1 %v2520_v27  ;;  %v2328_v48 = vpack.i.bf16 %v681_v46, %v680_v52  ;;  %v653_v53 = vld [vmem:[#allocation2 + $0x79] sm:$0xff]  ;;  %v2353_v19 = vpack.i.bf16 %v695_v14, %v694_v11  ;;  %v714_v52 = vld [vmem:[#allocation2 + $0x61] sm:$0xff] }
 0x15b   : > { %2324 = vrot.lane.b32.xlu1 %v2323_v51, %s2663_s12  ;;  %v2358_v2 = vpack.i.bf16 %v654_v17, %v653_v53  ;;  %v682_v39 = vld [vmem:[#allocation2 + $0x60] sm:$0xff] }
 0x15c   : > { %2304 = vrot.lane.b32.xlu0 %v2303_v49, %s2663_s12  ;;  %v2343_v49 = vpack.i.bf16 %v711_v42, %v710_v55  ;;  %v685_v27 = vld [vmem:[#allocation2 + $0x80] sm:$0xff] }
 0x15e   : > { %v688_v55 = vld [vmem:[#allocation2 + $0xa8] sm:$0xff] }
 0x15f   : > { %2339 = vrot.lane.b32.xlu1 %v2338_v37, %s2662_s11  ;;  %v684_v37 = vld [vmem:[#allocation2 + $0x78] sm:$0xff]  ;;  %v686_v17 = vld [vmem:[#allocation2 + $0x90] sm:$0xff] }
 0x160   : > { %2319 = vrot.lane.b32.xlu0 %v2313_v34, %s2663_s12  ;;  %v683_v34 = vld [vmem:[#allocation2 + $0x68] sm:$0xff]  ;;  %v2363_v46 = vpack.i.bf16 %v685_v27, %v684_v37  ;;  %v658_v14 = vld [vmem:[#allocation2 + $0xb1] sm:$0xff] }
 0x161   : > { %v2373_v42 = vpack.i.bf16 %v683_v34, %v682_v39  ;;  %v657_v11 = vld [vmem:[#allocation2 + $0xa9] sm:$0xff]  ;;  %v718_v34 = vld [vmem:[#allocation2 + $0x91] sm:$0xff]  ;;  %v719_v27 = vld [vmem:[#allocation2 + $0x99] sm:$0xff] }
 0x162   : > { %v2388_v53 = vpack.i.bf16 %v658_v14, %v657_v11  ;;  %v666_v11 = vld [vmem:[#allocation2 + $0x111] sm:$0xff] }
 0x163   : > { %2344 = vrot.lane.b32.xlu1 %v2343_v49, %s2664_s26 }
 0x164   : > { %2329 = vrot.lane.b32.xlu0 %v2328_v48, %s2662_s11  ;;  %v715_v48 = vld [vmem:[#allocation2 + $0x69] sm:$0xff] }
 0x167   : > { %2354 = vrot.lane.b32.xlu1 %v2353_v19, %s2662_s11  ;;  %v687_v19 = vld [vmem:[#allocation2 + $0x98] sm:$0xff] }
 0x168   : > { %2334 = vrot.lane.b32.xlu0 %v2323_v51, %s2664_s26  ;;  %v2378_v51 = vpack.i.bf16 %v715_v48, %v714_v52  ;;  %v2403_v39 = vpack.i.bf16 %v687_v19, %v686_v17  ;;  %v665_v48 = vld [vmem:[#allocation2 + $0x109] sm:$0xff] }
 0x169   : > { %v2428_v14 = vpack.i.bf16 %v666_v11, %v665_v48  ;;  %v699_v17 = vld [vmem:[#allocation2 + $0x128] sm:$0xff]  ;;  %v697_v19 = vld [vmem:[#allocation2 + $0x110] sm:$0xff]  ;;  %v700_v11 = vld [vmem:[#allocation2 + $0x138] sm:$0xff] }
 0x16b   : > { %2359 = vrot.lane.b32.xlu1 %v2358_v2, %s2663_s12 }
 0x16c   : > { %2349 = vrot.lane.b32.xlu0 %v2343_v49, %s2663_s12  ;;  %v689_v49 = vld [vmem:[#allocation2 + $0xb0] sm:$0xff] }
 0x16d   : > { %v2393_v37 = vpack.i.bf16 %v689_v49, %v688_v55  ;;  %v698_v55 = vld [vmem:[#allocation2 + $0x120] sm:$0xff] }
 0x16e   : > { %v2438_v49 = vpack.i.bf16 %v699_v17, %v698_v55  ;;  %v702_v17 = vld [vmem:[#allocation2 + $0x150] sm:$0xff] }
 0x16f   : > { %2374 = vrot.lane.b32.xlu1 %v2373_v42, %s2662_s11  ;;  %v2408_v42 = vpack.i.bf16 %v719_v27, %v718_v34  ;;  %v669_v27 = vld [vmem:[#allocation2 + $0x139] sm:$0xff] }
 0x170   : > { %2364 = vrot.lane.b32.xlu0 %v2363_v46, %s2662_s11  ;;  %v726_v46 = vld [vmem:[#allocation2 + $0xf1] sm:$0xff] }
 0x173   : > { %2379 = vrot.lane.b32.xlu1 %v2378_v51, %s2664_s26 }
 0x174   : > { %2369 = vrot.lane.b32.xlu0 %v2358_v2, %s2664_s26  ;;  %v727_v2 = vld [vmem:[#allocation2 + $0xf9] sm:$0xff] }
 0x175   : > { %v2413_v52 = vpack.i.bf16 %v727_v2, %v726_v46  ;;  %v673_v46 = vld [vmem:[#allocation2 + $0x169] sm:$0xff]  ;;  %v674_v2 = vld [vmem:[#allocation2 + $0x171] sm:$0xff] }
 0x177   : > { %2389 = vrot.lane.b32.xlu1 %v2388_v53, %s2663_s12 }
 0x178   : > { %2384 = vrot.lane.b32.xlu0 %v2378_v51, %s2663_s12  ;;  %v696_v51 = vld [vmem:[#allocation2 + $0x108] sm:$0xff] }
 0x17b   : > { %2404 = vrot.lane.b32.xlu1 %v2403_v39, %s2662_s11  ;;  %v2433_v39 = vpack.i.bf16 %v697_v19, %v696_v51  ;;  %v2473_v51 = vpack.i.bf16 %v674_v2, %v673_v46  ;;  %v703_v19 = vld [vmem:[#allocation2 + $0x158] sm:$0xff] }
 0x17c   : > { %2394 = vrot.lane.b32.xlu0 %v2393_v37, %s2662_s11  ;;  %v730_v37 = vld [vmem:[#allocation2 + $0x121] sm:$0xff] }
 0x17f   : > { %2409 = vrot.lane.b32.xlu1 %v2408_v42, %s2664_s26 }
 0x180   : > { %2399 = vrot.lane.b32.xlu0 %v2388_v53, %s2664_s26  ;;  %v731_v53 = vld [vmem:[#allocation2 + $0x129] sm:$0xff] }
 0x181   : > { %v2448_v34 = vpack.i.bf16 %v731_v53, %v730_v37  ;;  %v735_v37 = vld [vmem:[#allocation2 + $0x159] sm:$0xff]  ;;  %v705_v53 = vld [vmem:[#allocation2 + $0x170] sm:$0xff] }
 0x183   : > { %2414 = vrot.lane.b32.xlu1 %v2413_v52, %s2664_s26 }
 0x184   : > { %2419 = vrot.lane.b32.xlu0 %v2408_v42, %s2663_s12  ;;  %v670_v42 = vld [vmem:[#allocation2 + $0x141] sm:$0xff] }
 0x185   : > { %v2458_v48 = vpack.i.bf16 %v670_v42, %v669_v27  ;;  %v706_v27 = vld [vmem:[#allocation2 + $0x180] sm:$0xff]  ;;  %v707_v42 = vld [vmem:[#allocation2 + $0x188] sm:$0xff] }
 0x186   : > { %v2493_v2 = vpack.i.bf16 %v707_v42, %v706_v27 }
 0x187   : > { %2429 = vrot.lane.b32.xlu1 %v2428_v14, %s2663_s12 }
 0x188   : > { %2424 = vrot.lane.b32.xlu0 %v2413_v52, %s2663_s12  ;;  %v701_v52 = vld [vmem:[#allocation2 + $0x140] sm:$0xff] }
 0x189   : > { %v2463_v55 = vpack.i.bf16 %v701_v52, %v700_v11  ;;  %v738_v11 = vld [vmem:[#allocation2 + $0x181] sm:$0xff]  ;;  %v739_v52 = vld [vmem:[#allocation2 + $0x189] sm:$0xff] }
 0x18b   : > { %2439 = vrot.lane.b32.xlu1 %v2438_v49, %s2662_s11  ;;  %v2483_v49 = vpack.i.bf16 %v703_v19, %v702_v17  ;;  %v2522_v17 = vld [vmem:[#allocation6 + $0x8] sm:$0xff]   ;;  %v2508_v19 = vpack.i.bf16 %v739_v52, %v738_v11 }
 0x18c   : > { %2434 = vrot.lane.b32.xlu0 %v2433_v39, %s2662_s11  ;;  %v704_v39 = vld [vmem:[#allocation2 + $0x168] sm:$0xff] }
 0x18d   : > { %v2478_v46 = vpack.i.bf16 %v705_v53, %v704_v39 }
 0x18f   : > { %2449 = vrot.lane.b32.xlu1 %v2448_v34, %s2664_s26 }
 0x190   : > { %2444 = vrot.lane.b32.xlu0 %v2428_v14, %s2664_s26  ;;  %v734_v14 = vld [vmem:[#allocation2 + $0x151] sm:$0xff] }
 0x193   : > { %2459 = vrot.lane.b32.xlu1 %v2458_v48, %s2663_s12 }
 0x194   : > { %2454 = vrot.lane.b32.xlu0 %v2448_v34, %s2663_s12  ;;  %v2488_v34 = vpack.i.bf16 %v735_v37, %v734_v14 }
 0x197   : > { %2474 = vrot.lane.b32.xlu1 %v2473_v51, %s2663_s12 }
 0x198   : > { %2464 = vrot.lane.b32.xlu0 %v2463_v55, %s2662_s11  ;;  %v2521_v55 = vld [vmem:[#allocation6] sm:$0xff]  }
 0x199   : > { %2158 = vmatprep.subr.bf16.mxu0 %v2521_v55 }
 0x19a   : > { %2159 = vmatpush3.bf16.msra.mxu0 %v2521_v55 }
 0x19b   : > { %2484 = vrot.lane.b32.xlu1 %v2483_v49, %s2662_s11  ;;  %2160 = vmatprep.subr.bf16.mxu0 %v2522_v17 }
 0x19c   : > { %2469 = vrot.lane.b32.xlu0 %v2458_v48, %s2664_s26 }
 0x19e   : > { %2161 = vmatpush3.bf16.msra.mxu0 %v2522_v17 }
 0x19f   : > { %2489 = vrot.lane.b32.xlu1 %v2488_v34, %s2664_s26 }
 0x1a0   : > { %2479 = vrot.lane.b32.xlu0 %v2478_v46, %s2662_s11 }
 0x1a3   : > { %2494 = vrot.lane.b32.xlu1 %v2493_v2, %s2662_s11  ;;  %s1854_s11 = sshll.u32 %s3494_s17, 4  ;;  %s3560_s11 = int_to_ptr.vmem [resolvable:$true] %s1854_s11 }
 0x1a4   : > { %2499 = vrot.lane.b32.xlu0 %v2488_v34, %s2663_s12  ;;  %s2583_s6 = scalar_lea.vmem %s3560_s11, 4096  ;;  %p2590_p8 = scmp.lt.s32.totalorder %s3560_s11, %s2588_s24 }
 0x1a5   : > { %p2584_p1 = scmp.ne.s32.totalorder %s3560_s11, %s2583_s6  ;;  %p2591_p13 = scmp.lt.s32.totalorder %s2589_s15, %s2583_s6 }
 0x1a7   : > { %2509 = vrot.lane.b32.xlu1 %v2508_v19, %s2664_s26  ;;  %p2585_p4 = pnand %p2584_p1, %p2781_p12  ;;  %p2592_p3 = por %p2591_p13, %p2590_p8 }
 0x1a8   : > { %2504 = vrot.lane.b32.xlu0 %v2473_v51, %s2664_s26 }
 0x1a9   : > { %p2586_p6 = pneg %p2585_p4 }
 0x1ab   : > { %p2593_p7 = pnand %p2592_p3, %p2586_p6 }
 0x1bd   : > { %v2280_v48 = vpop.permute.xlu1 %2279 }
 0x1be   : > { %v2275_v49 = vpop.permute.xlu0 %2274  ;;  %v2282_v11 = vunpack.i.h.bf16 %v2280_v48  ;;  %v2281_v52 = vunpack.i.l.bf16 %v2280_v48 }
 0x1bf   : > { %v2276_v48 = vunpack.i.l.bf16 %v2275_v49 }
 0x1c1   : > { %v3218_v39 = vpop.permute.xlu1 %2289 }
 0x1c2   : > { %v2285_v14 = vpop.permute.xlu0 %2284 }
 0x1c3   : > { %v2287_v19 = vunpack.i.h.bf16 %v2285_v14  ;;  %v2286_v23 = vunpack.i.l.bf16 %v2285_v14 }
 0x1c5   : > { %v3220_v37 = vpop.permute.xlu1 %2309 }
 0x1c6   : > { %v3222_v53 = vpop.permute.xlu0 %2294 }
 0x1c9   : > { %v3224_v27 = vpop.permute.xlu1 %2314 }
 0x1ca   : > { %v3226_v42 = vpop.permute.xlu0 %2299 }
 0x1cd   : > { %v3228_v34 = vpop.permute.xlu1 %2324 }
 0x1ce   : > { %v2305_v46 = vpop.permute.xlu0 %2304 }
 0x1cf   : > { %v2307_v2 = vunpack.i.h.bf16 %v2305_v46  ;;  %v2306_v51 = vunpack.i.l.bf16 %v2305_v46  ;;  %v2277_v46 = vunpack.i.h.bf16 %v2275_v49 }
 0x1d1   : > { %v1125_v55 = vsel %vm589_vm1, %v557_v12, %v2307_v2  ;;  %v1124_v17 = vsel %vm589_vm1, %v556_v6, %v2306_v51  ;;  %v2340_v3 = vpop.permute.xlu1 %2339  ;;  %v1127_v14 = vsel %vm589_vm1, %v559_v10, %v2277_v46 }
 0x1d2   : > { %v1158_v8 = vsel %vm1156_vm3, %v1125_v55, %v2282_v11  ;;  %v1157_v13 = vsel %vm1156_vm3, %v1124_v17, %v2281_v52  ;;  %v3238_v38 = vpop.permute.xlu0 %2319  ;;  %v2342_v26 = vunpack.i.h.bf16 %v2340_v3  ;;  %v2341_v7 = vunpack.i.l.bf16 %v2340_v3 }
 0x1d3   : > { %v1190_v12 = vsel %vm1189_vm4, %v1157_v13, %v2286_v23  ;;  %v1191_v60 = vsel %vm1189_vm4, %v1158_v8, %v2287_v19  ;;  %v1126_v11 = vsel %vm589_vm1, %v558_v0, %v2276_v48 }
 0x1d4   : > { %v1222_v51 = vpack.c.bf16 %v1191_v60, %v1190_v12  ;;  %v1160_v49 = vsel %vm1156_vm3, %v1127_v14, %v2342_v26  ;;  %v1159_v3 = vsel %vm1156_vm3, %v1126_v11, %v2341_v7 }
 0x1d5   : > { %v2345_v2 = vpop.permute.xlu1 %2344 }
 0x1d6   : > { %v2330_v6 = vpop.permute.xlu0 %2329  ;;  %v2347_v52 = vunpack.i.h.bf16 %v2345_v2  ;;  %v2346_v55 = vunpack.i.l.bf16 %v2345_v2  ;;  %2126 = vmatprep.mubr.msk.bf16.mxu1 %vm346_vm0, %v1222_v51 }
 0x1d7   : > { %v2332_v26 = vunpack.i.h.bf16 %v2330_v6  ;;  %v2331_v46 = vunpack.i.l.bf16 %v2330_v6  ;;  %v2326_v6 = vunpack.i.l.bf16 %v3228_v34 }
 0x1d8   : > { %v1192_v8 = vsel %vm1189_vm4, %v1159_v3, %v2346_v55  ;;  %v1193_v13 = vsel %vm1189_vm4, %v1160_v49, %v2347_v52  ;;  %v2327_v52 = vunpack.i.h.bf16 %v3228_v34 }
 0x1d9   : > { %v1223_v23 = vpack.c.bf16 %v1193_v13, %v1192_v8  ;;  %v3253_v1 = vpop.permute.xlu1 %2354  ;;  %v1130_v13 = vsel %vm589_vm1, %v562_v24, %v2326_v6 }
 0x1da   : > { %v2335_v10 = vpop.permute.xlu0 %2334  ;;  %v1131_v8 = vsel %vm589_vm1, %v563_v35, %v2327_v52 }
 0x1db   : > { %2127 = vmatmul.mubr.msk.bf16.vlgmr.msra.gmra.mrb[16].mxu1 %vm346_vm0, %v1223_v23  ;;  %v2337_v12 = vunpack.i.h.bf16 %v2335_v10  ;;  %v2336_v60 = vunpack.i.l.bf16 %v2335_v10 }
 0x1dd   : > { %v3256_v56 = vpop.permute.xlu1 %2359 }
 0x1de   : > { %v2350_v0 = vpop.permute.xlu0 %2349 }
 0x1df   : > { %v2352_v17 = vunpack.i.h.bf16 %v2350_v0  ;;  %v2351_v19 = vunpack.i.l.bf16 %v2350_v0 }
 0x1e1   : > { %v1129_v48 = vsel %vm589_vm1, %v561_v41, %v2352_v17  ;;  %v1128_v7 = vsel %vm589_vm1, %v560_v30, %v2351_v19  ;;  %v2375_v14 = vpop.permute.xlu1 %2374 }
 0x1e2   : > { %v1161_v2 = vsel %vm1156_vm3, %v1128_v7, %v2331_v46  ;;  %v1162_v51 = vsel %vm1156_vm3, %v1129_v48, %v2332_v26  ;;  %v2365_v11 = vpop.permute.xlu0 %2364  ;;  %v2377_v55 = vunpack.i.h.bf16 %v2375_v14  ;;  %v2376_v31 = vunpack.i.l.bf16 %v2375_v14 }
 0x1e3   : > { %v1194_v41 = vsel %vm1189_vm4, %v1161_v2, %v2336_v60  ;;  %v1195_v20 = vsel %vm1189_vm4, %v1162_v51, %v2337_v12  ;;  %v2367_v16 = vunpack.i.h.bf16 %v2365_v11  ;;  %v2366_v7 = vunpack.i.l.bf16 %v2365_v11 }
 0x1e4   : > { %v1224_v49 = vpack.c.bf16 %v1195_v20, %v1194_v41  ;;  %v1164_v34 = vsel %vm1156_vm3, %v1131_v8, %v2377_v55  ;;  %v1163_v0 = vsel %vm1156_vm3, %v1130_v13, %v2376_v31  ;;  %v3649_v12 = vmax.f32 %v3053_v54, 0.0 }
 0x1e5   : > { %v2380_v30 = vpop.permute.xlu1 %2379  ;;  %v2362_v11 = vunpack.i.h.bf16 %v3256_v56  ;;  %v2361_v31 = vunpack.i.l.bf16 %v3256_v56  ;;  %v2312_v20 = vunpack.i.h.bf16 %v3220_v37  ;;  %v2311_v8 = vunpack.i.l.bf16 %v3220_v37 }
 0x1e6   : > { %v2370_v3 = vpop.permute.xlu0 %2369  ;;  %v2382_v23 = vunpack.i.h.bf16 %v2380_v30  ;;  %v2381_v10 = vunpack.i.l.bf16 %v2380_v30  ;;  %2130 = vmatprep.mubr.msk.bf16.mxu1 %vm346_vm0, %v1224_v49  ;;  %v2322_v49 = vunpack.i.h.bf16 %v3238_v38  ;;  %v2321_v30 = vunpack.i.l.bf16 %v3238_v38 }
 0x1e7   : > { %v2372_v2 = vunpack.i.h.bf16 %v2370_v3  ;;  %v2371_v51 = vunpack.i.l.bf16 %v2370_v3  ;;  %v2297_v13 = vunpack.i.h.bf16 %v3222_v53  ;;  %v2296_v38 = vunpack.i.l.bf16 %v3222_v53 }
 0x1e8   : > { %v1196_v17 = vsel %vm1189_vm4, %v1163_v0, %v2381_v10  ;;  %v1197_v19 = vsel %vm1189_vm4, %v1164_v34, %v2382_v23  ;;  %v3650_v0 = vmax.f32 %v3063_v5, 0.0  ;;  %v2317_v37 = vunpack.i.h.bf16 %v3224_v27 }
 0x1e9   : > { %v1225_v26 = vpack.c.bf16 %v1197_v19, %v1196_v17  ;;  %v2390_v25 = vpop.permute.xlu1 %2389  ;;  %v3651_v19 = vmax.f32 %v3050_v50, 0.0  ;;  %v3652_v5 = vmax.f32 %v2956_v9, 0.0  ;;  %v3653_v50 = vmax.f32 %v2940_v62, 0.0 }
 0x1ea   : > { %v2385_v46 = vpop.permute.xlu0 %2384  ;;  %v2392_v23 = vunpack.i.h.bf16 %v2390_v25  ;;  %v2391_v10 = vunpack.i.l.bf16 %v2390_v25  ;;  %v1135_v17 = vsel %vm589_vm1, %v3650_v0, %v2362_v11  ;;  %v2316_v53 = vunpack.i.l.bf16 %v3224_v27 }
 0x1eb   : > { %v2387_v35 = vunpack.i.h.bf16 %v2385_v46  ;;  %v2386_v48 = vunpack.i.l.bf16 %v2385_v46  ;;  %2131 = vmatmul.mubr.msk.bf16.gmra.mrb[20].mxu1 %vm346_vm0, %v1225_v26  ;;  %v1134_v26 = vsel %vm589_vm1, %v3651_v19, %v2361_v31  ;;  %v2302_v62 = vunpack.i.h.bf16 %v3226_v42 }
 0x1ec   : > { %v2301_v11 = vunpack.i.l.bf16 %v3226_v42  ;;  %v3657_v42 = vmax.f32 %v3117_v21, 0.0 }
 0x1ed   : > { %v1133_v24 = vsel %vm589_vm1, %v565_v44, %v2387_v35  ;;  %v1132_v60 = vsel %vm589_vm1, %v3649_v12, %v2386_v48  ;;  %v2405_v6 = vpop.permute.xlu1 %2404 }
 0x1ee   : > { %v1165_v14 = vsel %vm1156_vm3, %v1132_v60, %v2366_v7  ;;  %v1166_v52 = vsel %vm1156_vm3, %v1133_v24, %v2367_v16  ;;  %v2395_v55 = vpop.permute.xlu0 %2394  ;;  %v2407_v41 = vunpack.i.h.bf16 %v2405_v6  ;;  %v2406_v29 = vunpack.i.l.bf16 %v2405_v6 }
 0x1ef   : > { %v1198_v44 = vsel %vm1189_vm4, %v1165_v14, %v2371_v51  ;;  %v1199_v54 = vsel %vm1189_vm4, %v1166_v52, %v2372_v2  ;;  %v1141_v16 = vsel %vm589_vm1, %v3652_v5, %v2322_v49  ;;  %v1140_v7 = vsel %vm589_vm1, %v3653_v50, %v2321_v30 }
 0x1f0   : > { %v1226_v3 = vpack.c.bf16 %v1199_v54, %v1198_v44  ;;  %v1167_v25 = vsel %vm1156_vm3, %v1134_v26, %v2406_v29  ;;  %v1168_v48 = vsel %vm1156_vm3, %v1135_v17, %v2407_v41  ;;  %v3654_v60 = vmax.f32 %v3130_v36, 0.0 }
 0x1f1   : > { %v2410_v56 = vpop.permute.xlu1 %2409  ;;  %v3655_v51 = vmax.f32 %v3111_v61, 0.0  ;;  %v1174_v29 = vsel %vm1156_vm3, %v1141_v16, %v2297_v13  ;;  %v1173_v27 = vsel %vm1156_vm3, %v1140_v7, %v2296_v38  ;;  %v2397_v36 = vunpack.i.h.bf16 %v2395_v55 }
 0x1f2   : > { %v2400_v34 = vpop.permute.xlu0 %2399  ;;  %v2412_v46 = vunpack.i.h.bf16 %v2410_v56  ;;  %v2411_v35 = vunpack.i.l.bf16 %v2410_v56  ;;  %2134 = vmatprep.mubr.msk.bf16.mxu1 %vm346_vm0, %v1226_v3  ;;  %v1139_v2 = vsel %vm589_vm1, %v3654_v60, %v2392_v23  ;;  %v2396_v44 = vunpack.i.l.bf16 %v2395_v55 }
 0x1f3   : > { %v1138_v9 = vsel %vm589_vm1, %v3655_v51, %v2391_v10  ;;  %v1172_v61 = vsel %vm1156_vm3, %v1139_v2, %v2312_v20  ;;  %v3656_v49 = vmax.f32 %v3137_v32, 0.0  ;;  %v2402_v23 = vunpack.i.h.bf16 %v2400_v34 }
 0x1f4   : > { %v1200_v24 = vsel %vm1189_vm4, %v1167_v25, %v2411_v35  ;;  %v1201_v12 = vsel %vm1189_vm4, %v1168_v48, %v2412_v46  ;;  %v1171_v54 = vsel %vm1156_vm3, %v1138_v9, %v2311_v8  ;;  %v2401_v13 = vunpack.i.l.bf16 %v2400_v34 }
 0x1f5   : > { %v1227_v14 = vpack.c.bf16 %v1201_v12, %v1200_v24  ;;  %v2415_v52 = vpop.permute.xlu1 %2414  ;;  %v1206_v20 = vsel %vm1189_vm4, %v1173_v27, %v2301_v11  ;;  %v1207_v8 = vsel %vm1189_vm4, %v1174_v29, %v2302_v62  ;;  %v1204_v21 = vsel %vm1189_vm4, %v1171_v54, %v2316_v53 }
 0x1f6   : > { %v2420_v6 = vpop.permute.xlu0 %2419  ;;  %v1205_v19 = vsel %vm1189_vm4, %v1172_v61, %v2317_v37  ;;  %v2292_v34 = vunpack.i.h.bf16 %v3218_v39  ;;  %v2291_v26 = vunpack.i.l.bf16 %v3218_v39  ;;  %v2357_v46 = vunpack.i.h.bf16 %v3253_v1 }
 0x1f7   : > { %v2422_v31 = vunpack.i.h.bf16 %v2420_v6  ;;  %v2421_v41 = vunpack.i.l.bf16 %v2420_v6  ;;  %2135 = vmatmul.mubr.msk.bf16.gmra.mrb[24].mxu1 %vm346_vm0, %v1227_v14  ;;  %v2356_v35 = vunpack.i.l.bf16 %v3253_v1  ;;  %v1229_v50 = vpack.c.bf16 %v1205_v19, %v1204_v21 }
 0x1f8   : > { %v1230_v7 = vpack.c.bf16 %v1207_v8, %v1206_v20  ;;  %v2417_v24 = vunpack.i.h.bf16 %v2415_v52  ;;  %v2416_v12 = vunpack.i.l.bf16 %v2415_v52  ;;  %v3658_v37 = vmax.f32 %v2948_v4, 0.0 }
 0x1f9   : > { %v1137_v30 = vsel %vm589_vm1, %v3656_v49, %v2422_v31  ;;  %v1136_v3 = vsel %vm589_vm1, %v3657_v42, %v2421_v41  ;;  %v2430_v56 = vpop.permute.xlu1 %2429  ;;  %v3659_v2 = vmax.f32 %v2934_v58, 0.0  ;;  %v3660_v6 = vmax.f32 %v3012_v33, 0.0 }
 0x1fa   : > { %v1169_v10 = vsel %vm1156_vm3, %v1136_v3, %v2396_v44  ;;  %v1170_v55 = vsel %vm1156_vm3, %v1137_v30, %v2397_v36  ;;  %v2425_v0 = vpop.permute.xlu0 %2424  ;;  %v1143_v39 = vsel %vm589_vm1, %v3658_v37, %v2292_v34  ;;  %v3661_v62 = vmax.f32 %v2996_v22, 0.0 }
 0x1fb   : > { %v1202_v32 = vsel %vm1189_vm4, %v1169_v10, %v2401_v13  ;;  %v1203_v17 = vsel %vm1189_vm4, %v1170_v55, %v2402_v23  ;;  %v2427_v5 = vunpack.i.h.bf16 %v2425_v0  ;;  %v2426_v16 = vunpack.i.l.bf16 %v2425_v0 }
 0x1fc   : > { %v1228_v48 = vpack.c.bf16 %v1203_v17, %v1202_v32  ;;  %v1142_v1 = vsel %vm589_vm1, %v3659_v2, %v2291_v26  ;;  %v1176_v51 = vsel %vm1156_vm3, %v1143_v39, %v2357_v46  ;;  %v2432_v44 = vunpack.i.h.bf16 %v2430_v56 }
 0x1fd   : > { %v2440_v38 = vpop.permute.xlu1 %2439  ;;  %v1175_v9 = vsel %vm1156_vm3, %v1142_v1, %v2356_v35  ;;  %v1145_v4 = vsel %vm589_vm1, %v3660_v6, %v2427_v5  ;;  %v1144_v58 = vsel %vm589_vm1, %v3661_v62, %v2426_v16  ;;  %v1209_v29 = vsel %vm1189_vm4, %v1176_v51, %v2417_v24 }
 0x1fe   : > { %v2435_v25 = vpop.permute.xlu0 %2434  ;;  %2138 = vmatprep.mubr.msk.bf16.mxu1 %vm346_vm0, %v1228_v48  ;;  %v1208_v41 = vsel %vm1189_vm4, %v1175_v9, %v2416_v12  ;;  %v2431_v61 = vunpack.i.l.bf16 %v2430_v56  ;;  %v2442_v49 = vunpack.i.h.bf16 %v2440_v38  ;;  %v2441_v22 = vunpack.i.l.bf16 %v2440_v38 }
 0x1ff   : > { %v2437_v53 = vunpack.i.h.bf16 %v2435_v25  ;;  %v2436_v60 = vunpack.i.l.bf16 %v2435_v25  ;;  %2139 = vmatmul.mubr.msk.bf16.gmra.mrb[28].mxu1 %vm346_vm0, %v1229_v50  ;;  %v1231_v23 = vpack.c.bf16 %v1209_v29, %v1208_v41  ;;  %v3662_v55 = vmax.f32 %v3004_v28, 0.0 }
 0x200   : > { %2142 = vmatprep.mubr.msk.bf16.mxu1 %vm346_vm0, %v1230_v7  ;;  %v3663_v20 = vmax.f32 %v2990_v18, 0.0  ;;  %v3664_v16 = vmax.f32 %v3083_v40, 0.0  ;;  %v3665_v7 = vmax.f32 %v3059_v59, 0.0  ;;  %v3666_v59 = vmax.f32 %v3066_v15, 0.0 }
 0x201   : > { %v2450_v14 = vpop.permute.xlu1 %2449  ;;  %v1177_v27 = vsel %vm1156_vm3, %v1144_v58, %v2436_v60  ;;  %v1178_v36 = vsel %vm1156_vm3, %v1145_v4, %v2437_v53  ;;  %v1147_v0 = vsel %vm589_vm1, %v3662_v55, %v2432_v44  ;;  %v3667_v6 = vmax.f32 %v3056_v57, 0.0 }
 0x202   : > { %v2445_v52 = vpop.permute.xlu0 %2444  ;;  %v2452_v13 = vunpack.i.h.bf16 %v2450_v14  ;;  %v2451_v10 = vunpack.i.l.bf16 %v2450_v14  ;;  %v1146_v56 = vsel %vm589_vm1, %v3663_v20, %v2431_v61  ;;  %v1180_v32 = vsel %vm1156_vm3, %v1147_v0, %v2442_v49 }
 0x203   : > { %v2447_v11 = vunpack.i.h.bf16 %v2445_v52  ;;  %v2446_v31 = vunpack.i.l.bf16 %v2445_v52  ;;  %v1179_v8 = vsel %vm1156_vm3, %v1146_v56, %v2441_v22  ;;  %v3668_v22 = vmax.f32 %v3150_v63, 0.0 }
 0x204   : > { %v1212_v19 = vsel %vm1189_vm4, %v1179_v8, %v2451_v10  ;;  %v1213_v28 = vsel %vm1189_vm4, %v1180_v32, %v2452_v13  ;;  %v3671_v10 = vmax.f32 %v3120_v43, 0.0 }
 0x205   : > { %v1210_v33 = vsel %vm1189_vm4, %v1177_v27, %v2446_v31  ;;  %v1211_v54 = vsel %vm1189_vm4, %v1178_v36, %v2447_v11  ;;  %v2460_v42 = vpop.permute.xlu1 %2459  ;;  %v1233_v35 = vpack.c.bf16 %v1213_v28, %v1212_v19 }
 0x206   : > { %v1232_v30 = vpack.c.bf16 %v1211_v54, %v1210_v33  ;;  %v2455_v3 = vpop.permute.xlu0 %2454  ;;  %v2462_v38 = vunpack.i.h.bf16 %v2460_v42  ;;  %v2461_v25 = vunpack.i.l.bf16 %v2460_v42  ;;  %v3669_v42 = vmax.f32 %v3123_v45, 0.0 }
 0x207   : > { %2143 = vmatmul.mubr.msk.bf16.gmra.mrb[32].mxu1 %vm346_vm0, %v1231_v23  ;;  %v2457_v34 = vunpack.i.h.bf16 %v2455_v3  ;;  %v2456_v26 = vunpack.i.l.bf16 %v2455_v3  ;;  %v3670_v23 = vmax.f32 %v3133_v47, 0.0 }
 0x208   : > { %2146 = vmatprep.mubr.msk.bf16.mxu1 %vm346_vm0, %v1232_v30  ;;  %v1151_v52 = vsel %vm589_vm1, %v3666_v59, %v2462_v38  ;;  %v1150_v4 = vsel %vm589_vm1, %v3667_v6, %v2461_v25  ;;  %v2523_v38 = vld [vmem:[#allocation6 + $0x10] sm:$0xff]   ;;  %v2524_v25 = vld [vmem:[#allocation6 + $0x18] sm:$0xff]  }
 0x209   : > { %v2475_v17 = vpop.permute.xlu1 %2474  ;;  %v1149_v50 = vsel %vm589_vm1, %v3664_v16, %v2457_v34  ;;  %v1148_v24 = vsel %vm589_vm1, %v3665_v7, %v2456_v26  ;;  %2162 = vmatprep.subr.bf16.mxu0 %v2523_v38 }
 0x20a   : > { %v2465_v21 = vpop.permute.xlu0 %2464  ;;  %v2477_v27 = vunpack.i.h.bf16 %v2475_v17  ;;  %v2476_v15 = vunpack.i.l.bf16 %v2475_v17  ;;  %2163 = vmatpush3.bf16.msra.mxu0 %v2523_v38 }
 0x20b   : > { %v2467_v46 = vunpack.i.h.bf16 %v2465_v21  ;;  %v2466_v18 = vunpack.i.l.bf16 %v2465_v21  ;;  %2164 = vmatprep.subr.bf16.mxu0 %v2524_v25 }
 0x20c   : > { %v1155_v13 = vsel %vm589_vm1, %v3670_v23, %v2477_v27  ;;  %v1154_v55 = vsel %vm589_vm1, %v3671_v10, %v2476_v15 }
 0x20d   : > { %v2485_v48 = vpop.permute.xlu1 %2484  ;;  %v1181_v60 = vsel %vm1156_vm3, %v1148_v24, %v2466_v18  ;;  %v1182_v37 = vsel %vm1156_vm3, %v1149_v50, %v2467_v46 }
 0x20e   : > { %v2470_v5 = vpop.permute.xlu0 %2469  ;;  %v2487_v39 = vunpack.i.h.bf16 %v2485_v48  ;;  %v2486_v2 = vunpack.i.l.bf16 %v2485_v48  ;;  %2165 = vmatpush3.bf16.msra.mxu0 %v2524_v25  ;;  %v3433_v48 = vld [vmem:[%s3610_s4 + $0x1] ss:$0 sm:$0xff] }
 0x20f   : > { %v2472_v12 = vunpack.i.h.bf16 %v2470_v5  ;;  %v2471_v53 = vunpack.i.l.bf16 %v2470_v5  ;;  %2147 = vmatmul.mubr.msk.bf16.gmra.mrb[36].mxu1 %vm346_vm0, %v1233_v35 }
 0x210   : > { %v1183_v11 = vsel %vm1156_vm3, %v1150_v4, %v2486_v2  ;;  %v1184_v31 = vsel %vm1156_vm3, %v1151_v52, %v2487_v39 }
 0x211   : > { %v1214_v1 = vsel %vm1189_vm4, %v1181_v60, %v2471_v53  ;;  %v1215_v51 = vsel %vm1189_vm4, %v1182_v37, %v2472_v12  ;;  %v2490_v9 = vpop.permute.xlu1 %2489 }
 0x212   : > { %v1234_v40 = vpack.c.bf16 %v1215_v51, %v1214_v1  ;;  %v2480_v14 = vpop.permute.xlu0 %2479  ;;  %v2492_v62 = vunpack.i.h.bf16 %v2490_v9  ;;  %v2491_v58 = vunpack.i.l.bf16 %v2490_v9 }
 0x213   : > { %v2482_v0 = vunpack.i.h.bf16 %v2480_v14  ;;  %v2481_v20 = vunpack.i.l.bf16 %v2480_v14 }
 0x214   : > { %2150 = vmatprep.mubr.msk.bf16.mxu1 %vm346_vm0, %v1234_v40  ;;  %v1216_v41 = vsel %vm1189_vm4, %v1183_v11, %v2491_v58  ;;  %v1217_v29 = vsel %vm1189_vm4, %v1184_v31, %v2492_v62 }
 0x215   : > { %v1235_v36 = vpack.c.bf16 %v1217_v29, %v1216_v41  ;;  %v2495_v44 = vpop.permute.xlu1 %2494 }
 0x216   : > { %v2500_v61 = vpop.permute.xlu0 %2499  ;;  %v2497_v54 = vunpack.i.h.bf16 %v2495_v44  ;;  %v2496_v49 = vunpack.i.l.bf16 %v2495_v44 }
 0x217   : > { %v2502_v57 = vunpack.i.h.bf16 %v2500_v61  ;;  %v2501_v33 = vunpack.i.l.bf16 %v2500_v61  ;;  %2151 = vmatmul.mubr.msk.bf16.gmra.mrb[40].mxu1 %vm346_vm0, %v1235_v36 }
 0x218   : > { %v1187_v21 = vsel %vm1156_vm3, %v1154_v55, %v2496_v49  ;;  %v1188_v19 = vsel %vm1156_vm3, %v1155_v13, %v2497_v54 }
 0x219   : > { %v1153_v30 = vsel %vm589_vm1, %v3668_v22, %v2502_v57  ;;  %v1152_v3 = vsel %vm589_vm1, %v3669_v42, %v2501_v33  ;;  %v2510_v56 = vpop.permute.xlu1 %2509 }
 0x21a   : > { %v2505_v63 = vpop.permute.xlu0 %2504  ;;  %v2512_v8 = vunpack.i.h.bf16 %v2510_v56  ;;  %v2511_v32 = vunpack.i.l.bf16 %v2510_v56  ;;  %v1185_v47 = vsel %vm1156_vm3, %v1152_v3, %v2481_v20  ;;  %v1186_v28 = vsel %vm1156_vm3, %v1153_v30, %v2482_v0 }
 0x21b   : > { %v2507_v17 = vunpack.i.h.bf16 %v2505_v63  ;;  %v2506_v45 = vunpack.i.l.bf16 %v2505_v63 }
 0x21c   : > { %v1220_v43 = vsel %vm1189_vm4, %v1187_v21, %v2511_v32  ;;  %v1221_v34 = vsel %vm1189_vm4, %v1188_v19, %v2512_v8 }
 0x21d   : > { %v1218_v26 = vsel %vm1189_vm4, %v1185_v47, %v2506_v45  ;;  %v1219_v46 = vsel %vm1189_vm4, %v1186_v28, %v2507_v17  ;;  %v1237_v18 = vpack.c.bf16 %v1221_v34, %v1220_v43 }
 0x21e   : > { %v1236_v35 = vpack.c.bf16 %v1219_v46, %v1218_v26 }
 0x220   : > { %2154 = vmatprep.mubr.msk.bf16.mxu1 %vm346_vm0, %v1236_v35 }
 0x221   : > { %2155 = vmatmul.mubr.msk.bf16.gmra.mrb[44].mxu1 %vm346_vm0, %v1237_v18 }
 0x2ae   : > { %v2128_v5 = vpop.f32.mrb[16].mxu1 }
 0x2af   : > { %v1365_v16 = vadd.f32 %v2128_v5, %v3433_v48  ;;  %v1356_v50 = vpop.f32.mrb[17].mxu1 }
 0x2b0   : > { %v1357_v7 = vadd.f32 %v3433_v48, %v1356_v50  ;;  %v2129_v24 = vpop.f32.mrb[18].mxu1 }
 0x2b1   : > { %v1368_v12 = vadd.f32 %v2129_v24, %v3433_v48  ;;  %v1359_v53 = vpop.f32.mrb[19].mxu1  ;;  %v1485_v37 = vmax.f32 %v1365_v16, 0.0 }
 0x2b2   : > { %v1360_v60 = vadd.f32 %v3433_v48, %v1359_v53  ;;  %v1483_v2 = vmax.f32 %v1357_v7, 0.0 }
 0x2b3   : > { %v1486_v39 = vmax.f32 %v1368_v12, 0.0 }
 0x2b4   : > { %v1484_v1 = vmax.f32 %v1360_v60, 0.0 }
 0x2b5   : > { %v1516_v51 = vpack.c.bf16 %v1486_v39, %v1485_v37 }
 0x2b6   : > { %v1515_v40 = vpack.c.bf16 %v1484_v1, %v1483_v2 }
 0x2b8   : > { %2166 = vmatprep.mubr.msk.bf16.mxu0 %vm346_vm0, %v1515_v40 }
 0x2b9   : > { %2167 = vmatmul.mubr.msk.bf16.vlgmr.msra.gmra.mrb[16].mxu0 %vm346_vm0, %v1516_v51 }
 0x2be   : > { %v2132_v9 = vpop.f32.mrb[20].mxu1 }
 0x2bf   : > { %v1381_v14 = vadd.f32 %v2132_v9, %v3433_v48  ;;  %v1372_v59 = vpop.f32.mrb[21].mxu1 }
 0x2c0   : > { %v1373_v52 = vadd.f32 %v3433_v48, %v1372_v59  ;;  %v2133_v6 = vpop.f32.mrb[22].mxu1 }
 0x2c1   : > { %v1384_v4 = vadd.f32 %v2133_v6, %v3433_v48  ;;  %v1375_v62 = vpop.f32.mrb[23].mxu1  ;;  %v1489_v11 = vmax.f32 %v1381_v14, 0.0 }
 0x2c2   : > { %v1376_v58 = vadd.f32 %v3433_v48, %v1375_v62  ;;  %v1487_v41 = vmax.f32 %v1373_v52, 0.0 }
 0x2c3   : > { %v1490_v31 = vmax.f32 %v1384_v4, 0.0 }
 0x2c4   : > { %v1488_v29 = vmax.f32 %v1376_v58, 0.0 }
 0x2c5   : > { %v1518_v27 = vpack.c.bf16 %v1490_v31, %v1489_v11 }
 0x2c6   : > { %v1517_v15 = vpack.c.bf16 %v1488_v29, %v1487_v41 }
 0x2c8   : > { %2170 = vmatprep.mubr.msk.bf16.mxu0 %vm346_vm0, %v1517_v15 }
 0x2c9   : > { %2171 = vmatmul.mubr.msk.bf16.gmra.mrb[20].mxu0 %vm346_vm0, %v1518_v27 }
 0x2ca   : > { %v2136_v36 = vpop.f32.mrb[24].mxu1 }
 0x2cb   : > { %v1397_v44 = vadd.f32 %v2136_v36, %v3433_v48  ;;  %v1388_v61 = vpop.f32.mrb[25].mxu1 }
 0x2cc   : > { %v1389_v57 = vadd.f32 %v3433_v48, %v1388_v61  ;;  %v2137_v33 = vpop.f32.mrb[26].mxu1 }
 0x2cd   : > { %v1400_v54 = vadd.f32 %v2137_v33, %v3433_v48  ;;  %v1391_v49 = vpop.f32.mrb[27].mxu1  ;;  %v1493_v30 = vmax.f32 %v1397_v44, 0.0 }
 0x2ce   : > { %v1392_v22 = vadd.f32 %v3433_v48, %v1391_v49  ;;  %v1491_v3 = vmax.f32 %v1389_v57, 0.0 }
 0x2cf   : > { %v1494_v42 = vmax.f32 %v1400_v54, 0.0 }
 0x2d0   : > { %v1492_v23 = vmax.f32 %v1392_v22, 0.0 }
 0x2d1   : > { %v1520_v13 = vpack.c.bf16 %v1494_v42, %v1493_v30 }
 0x2d2   : > { %v1519_v10 = vpack.c.bf16 %v1492_v23, %v1491_v3  ;;  %v2140_v55 = vpop.f32.mrb[28].mxu1 }
 0x2d3   : > { %v1413_v0 = vadd.f32 %v2140_v55, %v3433_v48  ;;  %v1404_v20 = vpop.f32.mrb[29].mxu1 }
 0x2d4   : > { %2174 = vmatprep.mubr.msk.bf16.mxu0 %vm346_vm0, %v1519_v10  ;;  %v1405_v56 = vadd.f32 %v3433_v48, %v1404_v20  ;;  %v2141_v63 = vpop.f32.mrb[30].mxu1 }
 0x2d5   : > { %2175 = vmatmul.mubr.msk.bf16.gmra.mrb[24].mxu0 %vm346_vm0, %v1520_v13  ;;  %v1416_v8 = vadd.f32 %v2141_v63, %v3433_v48  ;;  %v1407_v32 = vpop.f32.mrb[31].mxu1  ;;  %v1497_v45 = vmax.f32 %v1413_v0, 0.0 }
 0x2d6   : > { %v1408_v17 = vadd.f32 %v3433_v48, %v1407_v32  ;;  %v1495_v19 = vmax.f32 %v1405_v56, 0.0 }
 0x2d7   : > { %v1498_v21 = vmax.f32 %v1416_v8, 0.0 }
 0x2d8   : > { %v1496_v47 = vmax.f32 %v1408_v17, 0.0  ;;  %v3486_v17 = vld [vmem:[%s3610_s4 + $0x2] ss:$0 sm:$0xff] }
 0x2d9   : > { %v1522_v28 = vpack.c.bf16 %v1498_v21, %v1497_v45 }
 0x2da   : > { %v1521_v43 = vpack.c.bf16 %v1496_v47, %v1495_v19  ;;  %v2144_v34 = vpop.f32.mrb[32].mxu1 }
 0x2db   : > { %v1429_v26 = vadd.f32 %v2144_v34, %v3433_v48  ;;  %v1420_v46 = vpop.f32.mrb[33].mxu1 }
 0x2dc   : > { %v1421_v18 = vadd.f32 %v3433_v48, %v1420_v46  ;;  %v2145_v35 = vpop.f32.mrb[34].mxu1  ;;  %2178 = vmatprep.mubr.msk.bf16.mxu0 %vm346_vm0, %v1521_v43 }
 0x2dd   : > { %v1432_v38 = vadd.f32 %v2145_v35, %v3433_v48  ;;  %v1423_v25 = vpop.f32.mrb[35].mxu1  ;;  %2179 = vmatmul.mubr.msk.bf16.gmra.mrb[28].mxu0 %vm346_vm0, %v1522_v28  ;;  %v1501_v16 = vmax.f32 %v1429_v26, 0.0 }
 0x2de   : > { %v1424_v5 = vadd.f32 %v3433_v48, %v1423_v25  ;;  %v1499_v7 = vmax.f32 %v1421_v18, 0.0 }
 0x2df   : > { %v1502_v50 = vmax.f32 %v1432_v38, 0.0 }
 0x2e0   : > { %v1500_v24 = vmax.f32 %v1424_v5, 0.0 }
 0x2e1   : > { %v1524_v12 = vpack.c.bf16 %v1502_v50, %v1501_v16 }
 0x2e2   : > { %v1523_v53 = vpack.c.bf16 %v1500_v24, %v1499_v7  ;;  %v2148_v60 = vpop.f32.mrb[36].mxu1 }
 0x2e3   : > { %v1445_v37 = vadd.f32 %v2148_v60, %v3433_v48  ;;  %v1436_v39 = vpop.f32.mrb[37].mxu1 }
 0x2e4   : > { %v1437_v2 = vadd.f32 %v3433_v48, %v1436_v39  ;;  %v2149_v1 = vpop.f32.mrb[38].mxu1  ;;  %2182 = vmatprep.mubr.msk.bf16.mxu0 %vm346_vm0, %v1523_v53 }
 0x2e5   : > { %v1448_v51 = vadd.f32 %v2149_v1, %v3433_v48  ;;  %v1439_v40 = vpop.f32.mrb[39].mxu1  ;;  %2183 = vmatmul.mubr.msk.bf16.gmra.mrb[32].mxu0 %vm346_vm0, %v1524_v12  ;;  %v1505_v14 = vmax.f32 %v1445_v37, 0.0 }
 0x2e6   : > { %v1440_v9 = vadd.f32 %v3433_v48, %v1439_v40  ;;  %v1503_v52 = vmax.f32 %v1437_v2, 0.0 }
 0x2e7   : > { %v1506_v59 = vmax.f32 %v1448_v51, 0.0 }
 0x2e8   : > { %v1504_v6 = vmax.f32 %v1440_v9, 0.0 }
 0x2e9   : > { %v1526_v4 = vpack.c.bf16 %v1506_v59, %v1505_v14 }
 0x2ea   : > { %v1525_v62 = vpack.c.bf16 %v1504_v6, %v1503_v52  ;;  %v2152_v58 = vpop.f32.mrb[40].mxu1 }
 0x2eb   : > { %v1461_v11 = vadd.f32 %v2152_v58, %v3433_v48  ;;  %v1452_v31 = vpop.f32.mrb[41].mxu1 }
 0x2ec   : > { %v1453_v41 = vadd.f32 %v3433_v48, %v1452_v31  ;;  %v2153_v29 = vpop.f32.mrb[42].mxu1  ;;  %2186 = vmatprep.mubr.msk.bf16.mxu0 %vm346_vm0, %v1525_v62 }
 0x2ed   : > { %v1464_v27 = vadd.f32 %v2153_v29, %v3433_v48  ;;  %v1455_v15 = vpop.f32.mrb[43].mxu1  ;;  %2187 = vmatmul.mubr.msk.bf16.gmra.mrb[36].mxu0 %vm346_vm0, %v1526_v4  ;;  %v1509_v44 = vmax.f32 %v1461_v11, 0.0 }
 0x2ee   : > { %v1456_v36 = vadd.f32 %v3433_v48, %v1455_v15  ;;  %v1507_v57 = vmax.f32 %v1453_v41, 0.0 }
 0x2ef   : > { %v1510_v61 = vmax.f32 %v1464_v27, 0.0 }
 0x2f0   : > { %v1508_v33 = vmax.f32 %v1456_v36, 0.0 }
 0x2f1   : > { %v1528_v54 = vpack.c.bf16 %v1510_v61, %v1509_v44 }
 0x2f2   : > { %v1527_v49 = vpack.c.bf16 %v1508_v33, %v1507_v57 }
 0x2f4   : > { %v2156_v22 = vpop.f32.mrb[44].mxu1  ;;  %2190 = vmatprep.mubr.msk.bf16.mxu0 %vm346_vm0, %v1527_v49 }
 0x2f5   : > { %v1477_v30 = vadd.f32 %v2156_v22, %v3433_v48  ;;  %v1468_v42 = vpop.f32.mrb[45].mxu1  ;;  %2191 = vmatmul.mubr.msk.bf16.gmra.mrb[40].mxu0 %vm346_vm0, %v1528_v54 }
 0x2f6   : > { %v1469_v3 = vadd.f32 %v3433_v48, %v1468_v42  ;;  %v2157_v23 = vpop.f32.mrb[46].mxu1 }
 0x2f7   : > { %v1480_v13 = vadd.f32 %v2157_v23, %v3433_v48  ;;  %v1471_v10 = vpop.f32.mrb[47].mxu1  ;;  %v1513_v0 = vmax.f32 %v1477_v30, 0.0 }
 0x2f8   : > { %v1472_v55 = vadd.f32 %v3433_v48, %v1471_v10  ;;  %v1511_v56 = vmax.f32 %v1469_v3, 0.0 }
 0x2f9   : > { %v1514_v20 = vmax.f32 %v1480_v13, 0.0 }
 0x2fa   : > { %v1512_v63 = vmax.f32 %v1472_v55, 0.0 }
 0x2fb   : > { %v1530_v8 = vpack.c.bf16 %v1514_v20, %v1513_v0 }
 0x2fc   : > { %v1529_v32 = vpack.c.bf16 %v1512_v63, %v1511_v56 }
 0x2fe   : > { %2194 = vmatprep.mubr.msk.bf16.mxu0 %vm346_vm0, %v1529_v32 }
 0x2ff   : > { %2195 = vmatmul.mubr.msk.bf16.gmra.mrb[44].mxu0 %vm346_vm0, %v1530_v8 }
 0x38c   : > { %v2168_v45 = vpop.f32.mrb[16].mxu0 }
 0x38d   : > { %v1658_v21 = vadd.f32 %v2168_v45, %v3486_v17  ;;  %v1649_v48 = vpop.f32.mrb[17].mxu0 }
 0x38e   : > { %v1650_v19 = vadd.f32 %v3486_v17, %v1649_v48  ;;  %v2169_v47 = vpop.f32.mrb[18].mxu0 }
 0x38f   : > { %v1778_v28 = vmax.f32 %v1658_v21, 0.0  ;;  %v1661_v43 = vadd.f32 %v2169_v47, %v3486_v17  ;;  %v1652_v34 = vpop.f32.mrb[19].mxu0 }
 0x390   : > { %v1776_v26 = vmax.f32 %v1650_v19, 0.0  ;;  %v1653_v46 = vadd.f32 %v3486_v17, %v1652_v34 }
 0x391   : > { %1810 = vst [vmem:[%s3494_s17 + $0x10] sm:$0xff] %v1778_v28  ;;  %v1779_v18 = vmax.f32 %v1661_v43, 0.0 }
 0x392   : > { %1808 = vst [vmem:[%s3494_s17] sm:$0xff] %v1776_v26  ;;  %v1777_v35 = vmax.f32 %v1653_v46, 0.0 }
 0x393   : > { %1811 = vst [vmem:[%s3494_s17 + $0x18] sm:$0xff] %v1779_v18 }
 0x394   : > { %1809 = vst [vmem:[%s3494_s17 + $0x8] sm:$0xff] %v1777_v35 }
 0x39c   : > { %v2172_v38 = vpop.f32.mrb[20].mxu0 }
 0x39d   : > { %v1674_v25 = vadd.f32 %v2172_v38, %v3486_v17  ;;  %v1665_v5 = vpop.f32.mrb[21].mxu0 }
 0x39e   : > { %v1666_v16 = vadd.f32 %v3486_v17, %v1665_v5  ;;  %v2173_v50 = vpop.f32.mrb[22].mxu0 }
 0x39f   : > { %v1782_v7 = vmax.f32 %v1674_v25, 0.0  ;;  %v1677_v24 = vadd.f32 %v2173_v50, %v3486_v17  ;;  %v1668_v12 = vpop.f32.mrb[23].mxu0 }
 0x3a0   : > { %v1780_v53 = vmax.f32 %v1666_v16, 0.0  ;;  %v1669_v60 = vadd.f32 %v3486_v17, %v1668_v12 }
 0x3a1   : > { %1814 = vst [vmem:[%s3494_s17 + $0x30] sm:$0xff] %v1782_v7  ;;  %v1783_v37 = vmax.f32 %v1677_v24, 0.0 }
 0x3a2   : > { %1812 = vst [vmem:[%s3494_s17 + $0x20] sm:$0xff] %v1780_v53  ;;  %v1781_v39 = vmax.f32 %v1669_v60, 0.0 }
 0x3a3   : > { %1815 = vst [vmem:[%s3494_s17 + $0x38] sm:$0xff] %v1783_v37 }
 0x3a4   : > { %1813 = vst [vmem:[%s3494_s17 + $0x28] sm:$0xff] %v1781_v39 }
 0x3a8   : > { %v2176_v2 = vpop.f32.mrb[24].mxu0 }
 0x3a9   : > { %v1690_v1 = vadd.f32 %v2176_v2, %v3486_v17  ;;  %v1681_v51 = vpop.f32.mrb[25].mxu0 }
 0x3aa   : > { %v1682_v40 = vadd.f32 %v3486_v17, %v1681_v51  ;;  %v2177_v9 = vpop.f32.mrb[26].mxu0 }
 0x3ab   : > { %v1786_v14 = vmax.f32 %v1690_v1, 0.0  ;;  %v1693_v59 = vadd.f32 %v2177_v9, %v3486_v17  ;;  %v1684_v52 = vpop.f32.mrb[27].mxu0 }
 0x3ac   : > { %v1784_v6 = vmax.f32 %v1682_v40, 0.0  ;;  %v1685_v4 = vadd.f32 %v3486_v17, %v1684_v52 }
 0x3ad   : > { %1818 = vst [vmem:[%s3494_s17 + $0x50] sm:$0xff] %v1786_v14  ;;  %v1787_v62 = vmax.f32 %v1693_v59, 0.0 }
 0x3ae   : > { %1816 = vst [vmem:[%s3494_s17 + $0x40] sm:$0xff] %v1784_v6  ;;  %v1785_v58 = vmax.f32 %v1685_v4, 0.0 }
 0x3af   : > { %1819 = vst [vmem:[%s3494_s17 + $0x58] sm:$0xff] %v1787_v62 }
 0x3b0   : > { %1817 = vst [vmem:[%s3494_s17 + $0x48] sm:$0xff] %v1785_v58  ;;  %v2180_v11 = vpop.f32.mrb[28].mxu0 }
 0x3b1   : > { %v1706_v31 = vadd.f32 %v2180_v11, %v3486_v17  ;;  %v1697_v41 = vpop.f32.mrb[29].mxu0 }
 0x3b2   : > { %v1698_v29 = vadd.f32 %v3486_v17, %v1697_v41  ;;  %v2181_v27 = vpop.f32.mrb[30].mxu0 }
 0x3b3   : > { %v1790_v15 = vmax.f32 %v1706_v31, 0.0  ;;  %v1709_v36 = vadd.f32 %v2181_v27, %v3486_v17  ;;  %v1700_v44 = vpop.f32.mrb[31].mxu0 }
 0x3b4   : > { %v1788_v61 = vmax.f32 %v1698_v29, 0.0  ;;  %v1701_v57 = vadd.f32 %v3486_v17, %v1700_v44 }
 0x3b5   : > { %1822 = vst [vmem:[%s3494_s17 + $0x70] sm:$0xff] %v1790_v15  ;;  %v1791_v33 = vmax.f32 %v1709_v36, 0.0 }
 0x3b6   : > { %1820 = vst [vmem:[%s3494_s17 + $0x60] sm:$0xff] %v1788_v61  ;;  %v1789_v54 = vmax.f32 %v1701_v57, 0.0 }
 0x3b7   : > { %1823 = vst [vmem:[%s3494_s17 + $0x78] sm:$0xff] %v1791_v33 }
 0x3b8   : > { %1821 = vst [vmem:[%s3494_s17 + $0x68] sm:$0xff] %v1789_v54  ;;  %v2184_v49 = vpop.f32.mrb[32].mxu0 }
 0x3b9   : > { %v1722_v22 = vadd.f32 %v2184_v49, %v3486_v17  ;;  %v1713_v30 = vpop.f32.mrb[33].mxu0 }
 0x3ba   : > { %v1714_v42 = vadd.f32 %v3486_v17, %v1713_v30  ;;  %v2185_v3 = vpop.f32.mrb[34].mxu0 }
 0x3bb   : > { %v1794_v23 = vmax.f32 %v1722_v22, 0.0  ;;  %v1725_v13 = vadd.f32 %v2185_v3, %v3486_v17  ;;  %v1716_v10 = vpop.f32.mrb[35].mxu0 }
 0x3bc   : > { %v1792_v55 = vmax.f32 %v1714_v42, 0.0  ;;  %v1717_v0 = vadd.f32 %v3486_v17, %v1716_v10 }
 0x3bd   : > { %1826 = vst [vmem:[%s3494_s17 + $0x90] sm:$0xff] %v1794_v23  ;;  %v1795_v20 = vmax.f32 %v1725_v13, 0.0 }
 0x3be   : > { %1824 = vst [vmem:[%s3494_s17 + $0x80] sm:$0xff] %v1792_v55  ;;  %v1793_v56 = vmax.f32 %v1717_v0, 0.0 }
 0x3bf   : > { %1827 = vst [vmem:[%s3494_s17 + $0x98] sm:$0xff] %v1795_v20 }
 0x3c0   : > { %1825 = vst [vmem:[%s3494_s17 + $0x88] sm:$0xff] %v1793_v56  ;;  %v2188_v63 = vpop.f32.mrb[36].mxu0 }
 0x3c1   : > { %v1738_v8 = vadd.f32 %v2188_v63, %v3486_v17  ;;  %v1729_v32 = vpop.f32.mrb[37].mxu0 }
 0x3c2   : > { %v1730_v45 = vadd.f32 %v3486_v17, %v1729_v32  ;;  %v2189_v21 = vpop.f32.mrb[38].mxu0 }
 0x3c3   : > { %v1798_v48 = vmax.f32 %v1738_v8, 0.0  ;;  %v1741_v19 = vadd.f32 %v2189_v21, %v3486_v17  ;;  %v1732_v47 = vpop.f32.mrb[39].mxu0 }
 0x3c4   : > { %v1796_v28 = vmax.f32 %v1730_v45, 0.0  ;;  %v1733_v43 = vadd.f32 %v3486_v17, %v1732_v47 }
 0x3c5   : > { %1830 = vst [vmem:[%s3494_s17 + $0xb0] sm:$0xff] %v1798_v48  ;;  %v1799_v34 = vmax.f32 %v1741_v19, 0.0 }
 0x3c6   : > { %1828 = vst [vmem:[%s3494_s17 + $0xa0] sm:$0xff] %v1796_v28  ;;  %v1797_v26 = vmax.f32 %v1733_v43, 0.0 }
 0x3c7   : > { %1831 = vst [vmem:[%s3494_s17 + $0xb8] sm:$0xff] %v1799_v34 }
 0x3c8   : > { %1829 = vst [vmem:[%s3494_s17 + $0xa8] sm:$0xff] %v1797_v26  ;;  %v2192_v46 = vpop.f32.mrb[40].mxu0 }
 0x3c9   : > { %v1754_v18 = vadd.f32 %v2192_v46, %v3486_v17  ;;  %v1745_v35 = vpop.f32.mrb[41].mxu0 }
 0x3ca   : > { %v1746_v38 = vadd.f32 %v3486_v17, %v1745_v35  ;;  %v2193_v25 = vpop.f32.mrb[42].mxu0 }
 0x3cb   : > { %v1802_v5 = vmax.f32 %v1754_v18, 0.0  ;;  %v1757_v16 = vadd.f32 %v2193_v25, %v3486_v17  ;;  %v1748_v50 = vpop.f32.mrb[43].mxu0 }
 0x3cc   : > { %v1800_v7 = vmax.f32 %v1746_v38, 0.0  ;;  %v1749_v24 = vadd.f32 %v3486_v17, %v1748_v50 }
 0x3cd   : > { %1834 = vst [vmem:[%s3494_s17 + $0xd0] sm:$0xff] %v1802_v5  ;;  %v1803_v12 = vmax.f32 %v1757_v16, 0.0 }
 0x3ce   : > { %1832 = vst [vmem:[%s3494_s17 + $0xc0] sm:$0xff] %v1800_v7  ;;  %v1801_v53 = vmax.f32 %v1749_v24, 0.0 }
 0x3cf   : > { %1835 = vst [vmem:[%s3494_s17 + $0xd8] sm:$0xff] %v1803_v12 }
 0x3d0   : > { %1833 = vst [vmem:[%s3494_s17 + $0xc8] sm:$0xff] %v1801_v53 }
 0x3d2   : > { %v2196_v60 = vpop.f32.mrb[44].mxu0 }
 0x3d3   : > { %v1770_v37 = vadd.f32 %v2196_v60, %v3486_v17  ;;  %v1761_v39 = vpop.f32.mrb[45].mxu0 }
 0x3d4   : > { %v1762_v2 = vadd.f32 %v3486_v17, %v1761_v39  ;;  %v2197_v1 = vpop.f32.mrb[46].mxu0 }
 0x3d5   : > { %v1806_v51 = vmax.f32 %v1770_v37, 0.0  ;;  %v1773_v40 = vadd.f32 %v2197_v1, %v3486_v17  ;;  %v1764_v9 = vpop.f32.mrb[47].mxu0 }
 0x3d6   : > { %v1804_v14 = vmax.f32 %v1762_v2, 0.0  ;;  %v1765_v59 = vadd.f32 %v3486_v17, %v1764_v9 }
 0x3d7   : > { %1838 = vst [vmem:[%s3494_s17 + $0xf0] sm:$0xff] %v1806_v51  ;;  %v1807_v52 = vmax.f32 %v1773_v40, 0.0 }
 0x3d8   : > { %1836 = vst [vmem:[%s3494_s17 + $0xe0] sm:$0xff] %v1804_v14  ;;  %v1805_v6 = vmax.f32 %v1765_v59, 0.0 }
 0x3d9   : > { %1839 = vst [vmem:[%s3494_s17 + $0xf8] sm:$0xff] %v1807_v52 }
 0x3da   : > { %1837 = vst [vmem:[%s3494_s17 + $0xe8] sm:$0xff] %v1805_v6 }
 0x3db   : > { %2596 = shalt.err (!%p2593_p7)
}
 0x3dc   : > { %s2597_s10 = scalar_lea.hbm %s3558_s14, 4096  ;;  %s2601_s28 = scalar_lea.hbm %s3611_s5, 16384 }
 0x3dd   : > { %p2598_p9 = scmp.ne.s32.totalorder %s3558_s14, %s2597_s10  ;;  %p2602_p5 = scmp.lt.u32.totalorder %s3558_s14, %s3611_s5 }
 0x3de   : > { %p2603_p10 = scmp.lt.u32.totalorder %s2601_s28, %s2597_s10  ;;  %p2605_p1 = scmp.lt.u32.totalorder %s2597_s10, %s3558_s14 }
 0x3df   : > { %p2599_p11 = pnand %p2598_p9, %p2781_p12 }
 0x3e0   : > { %p2604_p2 = por %p2603_p10, %p2602_p5 }
 0x3e1   : > { %p2600_p0 = pneg %p2599_p11 }
 0x3e2   : > { %p2606_p4 = por %p2605_p1, %p2604_p2 }
 0x3e4   : > { %p2607_p6 = pnand %p2606_p4, %p2600_p0 }
 0x3e6   : > { %2610 = shalt.err (!%p2607_p6)
}
 0x3e7   : > { %s2666_s27 = smov 128   ;;  %s2667_s12 = smov 8  }
 0x3e8   : > { %2212 = dma.vmem_to_hbm [thread:$0]  (%p2781_p12), %s3560_s11, 4096, %s3558_s14, %s1841_s22, %s2666_s27, %s2666_s27, %s2667_s12  }
 0x3e9 PF: > { %p2229_p8 = scmp.ge.s32.totalorder %s2653_s21, 2  ;;  %s1869_s26 = sand.u32 1, %s2641_s18  }
 0x3ea   : > { %p3672_p13 = scmp.ne.s32.totalorder %s3639_s25, 0  ;;  %s1870_s6 = scalar_lea.sflag [#allocation5], %s1869_s26 }
 0x3ec   : > { %p2223_p3 = pnand %p2229_p8, %p3672_p13 }
 0x3ee   : > { %2636 = dma.done.wait (!%p2223_p3), %s1870_s6, 4096  }
 0x3ef   : > { %2638 = vsyncadd (!%p2223_p3), %s1870_s6, 4294963200  ;;  %p19_p7 = scmp.ge.s32.totalorder %s2751_s30, 6   ;;  %s3673_s18 = smov %s2645_s19 }
 0x3f0   : > { %s3674_s19 = smov %s2649_s20  ;;  %s3675_s20 = smov %s2777_s8 }
 0x3f1   : > { %s3676_s21 = smov %s2751_s30  ;;  %21 = sbr.rel (!%p19_p7) target bundleno = 6 (0x6), region = 91 }
 0x3f8   :  { %1875 = vsyncpa [#allocation4], 1 }
 0x3f9   :  { %1877 = vsyncpa [#allocation4 + $0x1], 1 }
 0x3fa   :  { %1878 = vsyncpa [#allocation7], 1 }
 0x3fb   :  { %1879 = vsyncpa [#allocation5], 1 }
 0x3fc   :  { %1881 = vsyncpa [#allocation5 + $0x1], 1 }

</bundles_post_ra>
